<compile_context>
chip_gen: v7x
topology: tpu7x:2x2x1
jax: 0.10.0
libtpu: 0.0.40
codegen_flags: <defaults>
</compile_context>

<pallas_src>
import functools

import jax
import jax.numpy as jnp
from jax.experimental import pallas as pl
from jax.experimental.pallas import tpu as pltpu

LANE = 128


# ----------------------------- Pallas kernel ------------------------------ #
def _conv_bn_relu_kernel(x_ref, w_ref, b_ref, o_ref, *,
                         kh, kw, stride, dilation, Ho, Wo, relu):
    """One (batch-element, Cout-tile) grid step.

    x_ref: (Hp, Wp, Cin)      padded NHWC activations (compute dtype)
    w_ref: (kh*kw, Cin, tn)   per-tap weights, BN scale folded in
    b_ref: (1, tn)            folded bias (f32)
    o_ref: (Ho*Wo, tn)        output tile (f32)
    """
    tn = o_ref.shape[-1]
    acc = jnp.zeros((Ho * Wo, tn), jnp.float32)
    # Static unrolled loop over the kh*kw taps: shifted window x per-tap matmul.
    for t in range(kh * kw):
        i = (t // kw) * dilation
        j = (t % kw) * dilation
        if stride == 1:
            patch = x_ref[i:i + Ho, j:j + Wo, :]
        else:
            # TODO(synk): strided window loads are unexercised in the test.
            patch = x_ref[pl.ds(i, Ho, stride=stride),
                          pl.ds(j, Wo, stride=stride), :]
        acc = acc + jnp.dot(patch.reshape(Ho * Wo, -1), w_ref[t],
                            preferred_element_type=jnp.float32)
    y = acc + b_ref[...]                     # (1, tn) broadcast over rows
    if relu:
        y = jnp.maximum(y, 0.0)
    o_ref[...] = y.astype(o_ref.dtype)


# ------------------------------ host wrapper ------------------------------ #
def conv_bn_relu(x_nchw, weight, bias_vec, *, stride, padding, dilation,
                 relu, compute_dtype=jnp.bfloat16):
    """x_nchw: (N,Cin,H,W) f32.  weight: (Cout,Cin,kh,kw) with BN scale folded
    in.  bias_vec: (Cout,) folded bias.  Returns (N,Cout,Ho,Wo) f32."""
    N, Cin, H, W = x_nchw.shape
    Cout, _, kh, kw = weight.shape
    Ho = (H + 2 * padding - dilation * (kh - 1) - 1) // stride + 1
    Wo = (W + 2 * padding - dilation * (kw - 1) - 1) // stride + 1
    Hp, Wp = H + 2 * padding, W + 2 * padding

    # NHWC (channels on lanes) + spatial zero-pad; cast at the kernel boundary.
    x = jnp.transpose(x_nchw, (0, 2, 3, 1))
    if padding:
        x = jnp.pad(x, ((0, 0), (padding, padding), (padding, padding), (0, 0)))
    x = x.astype(compute_dtype)

    # (Cout,Cin,kh,kw) -> (kh*kw, Cin, Cout); pad Cout to a multiple of 128 so
    # the output tile is lane-dense.  Padded weight/bias columns are zero.
    w = jnp.transpose(weight, (2, 3, 1, 0)).reshape(kh * kw, Cin, Cout)
    tn = LANE
    Cout_p = pl.cdiv(Cout, tn) * tn
    if Cout_p != Cout:
        w = jnp.pad(w, ((0, 0), (0, 0), (0, Cout_p - Cout)))
        bias_vec = jnp.pad(bias_vec, (0, Cout_p - Cout))
    w = w.astype(compute_dtype)
    b = bias_vec.reshape(1, Cout_p).astype(jnp.float32)

    # Explicit VMEM budget: double-buffered inputs + double-buffered output
    # tile + f32 accumulator, with slack; clamped to v7x-safe limits.
    isz = jnp.dtype(compute_dtype).itemsize
    est = (2 * (Hp * Wp * Cin * isz + kh * kw * Cin * tn * isz + tn * 4)
           + 2 * Ho * Wo * tn * 4 + Ho * Wo * tn * 4)
    vmem_limit = int(min(max(4 * est, 32 * 2 ** 20), 64 * 2 ** 20))

    grid = (N, Cout_p // tn)
    out = pl.pallas_call(
        functools.partial(_conv_bn_relu_kernel, kh=kh, kw=kw, stride=stride,
                          dilation=dilation, Ho=Ho, Wo=Wo, relu=relu),
        out_shape=jax.ShapeDtypeStruct((N, Ho * Wo, Cout_p), jnp.float32),
        grid_spec=pltpu.PrefetchScalarGridSpec(
            num_scalar_prefetch=0,
            grid=grid,
            in_specs=[
                # full padded spatial window for one batch element
                pl.BlockSpec((None, Hp, Wp, Cin), lambda n, co: (n, 0, 0, 0)),
                # all taps, full Cin, one lane-dense Cout panel
                pl.BlockSpec((kh * kw, Cin, tn), lambda n, co: (0, 0, co)),
                # folded bias panel
                pl.BlockSpec((1, tn), lambda n, co: (0, co)),
            ],
            out_specs=pl.BlockSpec((None, Ho * Wo, tn),
                                   lambda n, co: (n, 0, co)),
        ),
        compiler_params=pltpu.CompilerParams(
            dimension_semantics=("parallel", "parallel"),
            vmem_limit_bytes=vmem_limit),
    )(x, w, b)

    out = out[:, :, :Cout].reshape(N, Ho, Wo, Cout)
    return jnp.transpose(out, (0, 3, 1, 2))   # back to NCHW (PyTorch layout)


# ------------------------------- module ----------------------------------- #
class BasicConvPallas:
    """JAX/Pallas equivalent of the PyTorch BasicConv module (inference BN)."""

    def __init__(self, in_planes, out_planes, kernel_size, stride=1,
                 padding=0, dilation=1, groups=1, relu=True, bn=True,
                 bias=False, *, compute_dtype=jnp.bfloat16, key=None):
        assert groups == 1, "groups > 1 not implemented"  # TODO(synk): grouped conv
        if key is None:
            key = jax.random.PRNGKey(0)
        kw_, kb_, kg_, kbeta_, km_, kv_ = jax.random.split(key, 6)

        self.in_planes = in_planes
        self.out_channels = out_planes
        self.kernel_size = kernel_size
        self.stride = stride
        self.padding = padding
        self.dilation = dilation
        self.relu = relu
        self.use_bn = bn
        self.eps = 1e-5
        self.compute_dtype = compute_dtype

        # deterministic parameter init (synthetic)
        fan_in = in_planes * kernel_size * kernel_size
        self.weight = (jax.random.normal(
            kw_, (out_planes, in_planes, kernel_size, kernel_size),
            dtype=jnp.float32) / jnp.sqrt(fan_in))
        self.conv_bias = (jax.random.normal(kb_, (out_planes,), jnp.float32) * 0.1
                          if bias else None)
        if bn:
            self.gamma = 1.0 + 0.1 * jax.random.normal(kg_, (out_planes,), jnp.float32)
            self.beta = 0.1 * jax.random.normal(kbeta_, (out_planes,), jnp.float32)
            self.running_mean = 0.1 * jax.random.normal(km_, (out_planes,), jnp.float32)
            self.running_var = jnp.abs(
                1.0 + 0.1 * jax.random.normal(kv_, (out_planes,), jnp.float32))

    def _folded_params(self):
        # Fold conv bias + inference-mode BN into per-channel scale/shift, then
        # fold the scale into the weight so the kernel epilogue is add + ReLU.
        if self.use_bn:
            scale = self.gamma / jnp.sqrt(self.running_var + self.eps)
            shift = self.beta - self.running_mean * scale
        else:
            scale = jnp.ones((self.out_channels,), jnp.float32)
            shift = jnp.zeros((self.out_channels,), jnp.float32)
        if self.conv_bias is not None:
            shift = shift + scale * self.conv_bias
        w_folded = self.weight * scale[:, None, None, None]
        return w_folded, shift

    def __call__(self, x):
        w_folded, shift = self._folded_params()
        return conv_bn_relu(x, w_folded, shift,
                            stride=self.stride, padding=self.padding,
                            dilation=self.dilation, relu=self.relu,
                            compute_dtype=self.compute_dtype)


# ------------------------------- reference -------------------------------- #
def _reference(mod, x):
    dn = jax.lax.conv_dimension_numbers(x.shape, mod.weight.shape,
                                        ("NCHW", "OIHW", "NCHW"))
    y = jax.lax.conv_general_dilated(
        x, mod.weight, window_strides=(mod.stride, mod.stride),
        padding=[(mod.padding, mod.padding)] * 2,
        rhs_dilation=(mod.dilation, mod.dilation), dimension_numbers=dn)
    if mod.conv_bias is not None:
        y = y + mod.conv_bias[None, :, None, None]
    if mod.use_bn:
        scale = mod.gamma / jnp.sqrt(mod.running_var + mod.eps)
        shift = mod.beta - mod.running_mean * scale
        y = y * scale[None, :, None, None] + shift[None, :, None, None]
    if mod.relu:
        y = jnp.maximum(y, 0.0)
    return y


if __name__ == "__main__":
    key = jax.random.PRNGKey(0)
    kx, kp = jax.random.split(key)

    N, Cin, H, W = 2, 4, 16, 16
    Cout, ksize = 8, 3
    x = jax.random.normal(kx, (N, Cin, H, W), dtype=jnp.float32)

    # f32 operand path: tight check against the XLA conv reference.
    mod_f32 = BasicConvPallas(Cin, Cout, ksize, stride=1, padding=1,
                              compute_dtype=jnp.float32, key=kp)
    out_f32 = jax.block_until_ready(mod_f32(x))
    ref = _reference(mod_f32, x)
    assert out_f32.shape == (N, Cout, H, W), out_f32.shape
    assert jnp.allclose(out_f32, ref, atol=1e-4, rtol=1e-4), \
        float(jnp.max(jnp.abs(out_f32 - ref)))

    # bf16 operand path (default; v6e/v7x MXU peak): f32 accumulation, loose tol.
    mod_bf16 = BasicConvPallas(Cin, Cout, ksize, stride=1, padding=1,
                               compute_dtype=jnp.bfloat16, key=kp)
    out_bf16 = jax.block_until_ready(mod_bf16(x))
    assert out_bf16.shape == (N, Cout, H, W), out_bf16.shape
    assert jnp.allclose(out_bf16, ref, atol=5e-2, rtol=5e-2), \
        float(jnp.max(jnp.abs(out_bf16 - ref)))

    print("KERNEL_OK")
</pallas_src>

<mosaic_0001>
module attributes {stable_mosaic.version = 11 : i64} {
  func.func @_conv_bn_relu_kernel(%arg0: i32, %arg1: i32, %arg2: memref<1x18x18x4xf32, #tpu.memory_space<vmem>>, %arg3: memref<9x4x128xf32, #tpu.memory_space<vmem>>, %arg4: memref<1x128xf32, #tpu.memory_space<vmem>>, %arg5: memref<1x256x128xf32, #tpu.memory_space<vmem>>) attributes {dimension_semantics = [#tpu.dimension_semantics<parallel>, #tpu.dimension_semantics<parallel>], iteration_bounds = array<i64: 2, 1>, scalar_prefetch = 0 : i64, scratch_operands = 0 : i64, tpu.core_type = #tpu.core_type<tc>, window_params = [{transform_indices = @transform_0, window_bounds = array<i64: 1, 18, 18, 4>}, {transform_indices = @transform_1, window_bounds = array<i64: 9, 4, 128>}, {transform_indices = @transform_2, window_bounds = array<i64: 1, 128>}, {transform_indices = @transform_3, window_bounds = array<i64: 1, 256, 128>}]} {
    %cst = arith.constant 0.000000e+00 : f32
    %0 = vector.broadcast %cst : f32 to vector<256x128xf32>
    %c0 = arith.constant 0 : index
    %c0_0 = arith.constant 0 : index
    %c0_1 = arith.constant 0 : index
    %c0_2 = arith.constant 0 : index
    %1 = vector.load %arg2[%c0, %c0_0, %c0_1, %c0_2] : memref<1x18x18x4xf32, #tpu.memory_space<vmem>>, vector<1x16x16x4xf32>
    %2 = vector.shape_cast %1 : vector<1x16x16x4xf32> to vector<16x16x4xf32>
    %3 = vector.shape_cast %2 : vector<16x16x4xf32> to vector<256x4xf32>
    %c0_3 = arith.constant 0 : index
    %c0_4 = arith.constant 0 : index
    %c0_5 = arith.constant 0 : index
    %4 = vector.load %arg3[%c0_3, %c0_4, %c0_5] : memref<9x4x128xf32, #tpu.memory_space<vmem>>, vector<1x4x128xf32>
    %5 = vector.shape_cast %4 : vector<1x4x128xf32> to vector<4x128xf32>
    %cst_6 = arith.constant dense<0.000000e+00> : vector<256x128xf32>
    %6 = tpu.matmul %3, %5, %cst_6 {dimension_numbers = #tpu.dot_dimension_numbers<[1], [0], [0], [1], [0, 0, 1, 1], [], []>} : vector<256x4xf32>, vector<4x128xf32>, vector<256x128xf32> -> vector<256x128xf32>
    %7 = arith.addf %0, %6 : vector<256x128xf32>
    %c0_7 = arith.constant 0 : index
    %c0_8 = arith.constant 0 : index
    %c1 = arith.constant 1 : index
    %c0_9 = arith.constant 0 : index
    %8 = vector.load %arg2[%c0_7, %c0_8, %c1, %c0_9] : memref<1x18x18x4xf32, #tpu.memory_space<vmem>>, vector<1x16x16x4xf32>
    %9 = vector.shape_cast %8 : vector<1x16x16x4xf32> to vector<16x16x4xf32>
    %10 = vector.shape_cast %9 : vector<16x16x4xf32> to vector<256x4xf32>
    %c1_10 = arith.constant 1 : index
    %c0_11 = arith.constant 0 : index
    %c0_12 = arith.constant 0 : index
    %11 = vector.load %arg3[%c1_10, %c0_11, %c0_12] : memref<9x4x128xf32, #tpu.memory_space<vmem>>, vector<1x4x128xf32>
    %12 = vector.shape_cast %11 : vector<1x4x128xf32> to vector<4x128xf32>
    %cst_13 = arith.constant dense<0.000000e+00> : vector<256x128xf32>
    %13 = tpu.matmul %10, %12, %cst_13 {dimension_numbers = #tpu.dot_dimension_numbers<[1], [0], [0], [1], [0, 0, 1, 1], [], []>} : vector<256x4xf32>, vector<4x128xf32>, vector<256x128xf32> -> vector<256x128xf32>
    %14 = arith.addf %7, %13 : vector<256x128xf32>
    %c0_14 = arith.constant 0 : index
    %c0_15 = arith.constant 0 : index
    %c2 = arith.constant 2 : index
    %c0_16 = arith.constant 0 : index
    %15 = vector.load %arg2[%c0_14, %c0_15, %c2, %c0_16] : memref<1x18x18x4xf32, #tpu.memory_space<vmem>>, vector<1x16x16x4xf32>
    %16 = vector.shape_cast %15 : vector<1x16x16x4xf32> to vector<16x16x4xf32>
    %17 = vector.shape_cast %16 : vector<16x16x4xf32> to vector<256x4xf32>
    %c2_17 = arith.constant 2 : index
    %c0_18 = arith.constant 0 : index
    %c0_19 = arith.constant 0 : index
    %18 = vector.load %arg3[%c2_17, %c0_18, %c0_19] : memref<9x4x128xf32, #tpu.memory_space<vmem>>, vector<1x4x128xf32>
    %19 = vector.shape_cast %18 : vector<1x4x128xf32> to vector<4x128xf32>
    %cst_20 = arith.constant dense<0.000000e+00> : vector<256x128xf32>
    %20 = tpu.matmul %17, %19, %cst_20 {dimension_numbers = #tpu.dot_dimension_numbers<[1], [0], [0], [1], [0, 0, 1, 1], [], []>} : vector<256x4xf32>, vector<4x128xf32>, vector<256x128xf32> -> vector<256x128xf32>
    %21 = arith.addf %14, %20 : vector<256x128xf32>
    %c0_21 = arith.constant 0 : index
    %c1_22 = arith.constant 1 : index
    %c0_23 = arith.constant 0 : index
    %c0_24 = arith.constant 0 : index
    %22 = vector.load %arg2[%c0_21, %c1_22, %c0_23, %c0_24] : memref<1x18x18x4xf32, #tpu.memory_space<vmem>>, vector<1x16x16x4xf32>
    %23 = vector.shape_cast %22 : vector<1x16x16x4xf32> to vector<16x16x4xf32>
    %24 = vector.shape_cast %23 : vector<16x16x4xf32> to vector<256x4xf32>
    %c3 = arith.constant 3 : index
    %c0_25 = arith.constant 0 : index
    %c0_26 = arith.constant 0 : index
    %25 = vector.load %arg3[%c3, %c0_25, %c0_26] : memref<9x4x128xf32, #tpu.memory_space<vmem>>, vector<1x4x128xf32>
    %26 = vector.shape_cast %25 : vector<1x4x128xf32> to vector<4x128xf32>
    %cst_27 = arith.constant dense<0.000000e+00> : vector<256x128xf32>
    %27 = tpu.matmul %24, %26, %cst_27 {dimension_numbers = #tpu.dot_dimension_numbers<[1], [0], [0], [1], [0, 0, 1, 1], [], []>} : vector<256x4xf32>, vector<4x128xf32>, vector<256x128xf32> -> vector<256x128xf32>
    %28 = arith.addf %21, %27 : vector<256x128xf32>
    %c0_28 = arith.constant 0 : index
    %c1_29 = arith.constant 1 : index
    %c1_30 = arith.constant 1 : index
    %c0_31 = arith.constant 0 : index
    %29 = vector.load %arg2[%c0_28, %c1_29, %c1_30, %c0_31] : memref<1x18x18x4xf32, #tpu.memory_space<vmem>>, vector<1x16x16x4xf32>
    %30 = vector.shape_cast %29 : vector<1x16x16x4xf32> to vector<16x16x4xf32>
    %31 = vector.shape_cast %30 : vector<16x16x4xf32> to vector<256x4xf32>
    %c4 = arith.constant 4 : index
    %c0_32 = arith.constant 0 : index
    %c0_33 = arith.constant 0 : index
    %32 = vector.load %arg3[%c4, %c0_32, %c0_33] : memref<9x4x128xf32, #tpu.memory_space<vmem>>, vector<1x4x128xf32>
    %33 = vector.shape_cast %32 : vector<1x4x128xf32> to vector<4x128xf32>
    %cst_34 = arith.constant dense<0.000000e+00> : vector<256x128xf32>
    %34 = tpu.matmul %31, %33, %cst_34 {dimension_numbers = #tpu.dot_dimension_numbers<[1], [0], [0], [1], [0, 0, 1, 1], [], []>} : vector<256x4xf32>, vector<4x128xf32>, vector<256x128xf32> -> vector<256x128xf32>
    %35 = arith.addf %28, %34 : vector<256x128xf32>
    %c0_35 = arith.constant 0 : index
    %c1_36 = arith.constant 1 : index
    %c2_37 = arith.constant 2 : index
    %c0_38 = arith.constant 0 : index
    %36 = vector.load %arg2[%c0_35, %c1_36, %c2_37, %c0_38] : memref<1x18x18x4xf32, #tpu.memory_space<vmem>>, vector<1x16x16x4xf32>
    %37 = vector.shape_cast %36 : vector<1x16x16x4xf32> to vector<16x16x4xf32>
    %38 = vector.shape_cast %37 : vector<16x16x4xf32> to vector<256x4xf32>
    %c5 = arith.constant 5 : index
    %c0_39 = arith.constant 0 : index
    %c0_40 = arith.constant 0 : index
    %39 = vector.load %arg3[%c5, %c0_39, %c0_40] : memref<9x4x128xf32, #tpu.memory_space<vmem>>, vector<1x4x128xf32>
    %40 = vector.shape_cast %39 : vector<1x4x128xf32> to vector<4x128xf32>
    %cst_41 = arith.constant dense<0.000000e+00> : vector<256x128xf32>
    %41 = tpu.matmul %38, %40, %cst_41 {dimension_numbers = #tpu.dot_dimension_numbers<[1], [0], [0], [1], [0, 0, 1, 1], [], []>} : vector<256x4xf32>, vector<4x128xf32>, vector<256x128xf32> -> vector<256x128xf32>
    %42 = arith.addf %35, %41 : vector<256x128xf32>
    %c0_42 = arith.constant 0 : index
    %c2_43 = arith.constant 2 : index
    %c0_44 = arith.constant 0 : index
    %c0_45 = arith.constant 0 : index
    %43 = vector.load %arg2[%c0_42, %c2_43, %c0_44, %c0_45] : memref<1x18x18x4xf32, #tpu.memory_space<vmem>>, vector<1x16x16x4xf32>
    %44 = vector.shape_cast %43 : vector<1x16x16x4xf32> to vector<16x16x4xf32>
    %45 = vector.shape_cast %44 : vector<16x16x4xf32> to vector<256x4xf32>
    %c6 = arith.constant 6 : index
    %c0_46 = arith.constant 0 : index
    %c0_47 = arith.constant 0 : index
    %46 = vector.load %arg3[%c6, %c0_46, %c0_47] : memref<9x4x128xf32, #tpu.memory_space<vmem>>, vector<1x4x128xf32>
    %47 = vector.shape_cast %46 : vector<1x4x128xf32> to vector<4x128xf32>
    %cst_48 = arith.constant dense<0.000000e+00> : vector<256x128xf32>
    %48 = tpu.matmul %45, %47, %cst_48 {dimension_numbers = #tpu.dot_dimension_numbers<[1], [0], [0], [1], [0, 0, 1, 1], [], []>} : vector<256x4xf32>, vector<4x128xf32>, vector<256x128xf32> -> vector<256x128xf32>
    %49 = arith.addf %42, %48 : vector<256x128xf32>
    %c0_49 = arith.constant 0 : index
    %c2_50 = arith.constant 2 : index
    %c1_51 = arith.constant 1 : index
    %c0_52 = arith.constant 0 : index
    %50 = vector.load %arg2[%c0_49, %c2_50, %c1_51, %c0_52] : memref<1x18x18x4xf32, #tpu.memory_space<vmem>>, vector<1x16x16x4xf32>
    %51 = vector.shape_cast %50 : vector<1x16x16x4xf32> to vector<16x16x4xf32>
    %52 = vector.shape_cast %51 : vector<16x16x4xf32> to vector<256x4xf32>
    %c7 = arith.constant 7 : index
    %c0_53 = arith.constant 0 : index
    %c0_54 = arith.constant 0 : index
    %53 = vector.load %arg3[%c7, %c0_53, %c0_54] : memref<9x4x128xf32, #tpu.memory_space<vmem>>, vector<1x4x128xf32>
    %54 = vector.shape_cast %53 : vector<1x4x128xf32> to vector<4x128xf32>
    %cst_55 = arith.constant dense<0.000000e+00> : vector<256x128xf32>
    %55 = tpu.matmul %52, %54, %cst_55 {dimension_numbers = #tpu.dot_dimension_numbers<[1], [0], [0], [1], [0, 0, 1, 1], [], []>} : vector<256x4xf32>, vector<4x128xf32>, vector<256x128xf32> -> vector<256x128xf32>
    %56 = arith.addf %49, %55 : vector<256x128xf32>
    %c0_56 = arith.constant 0 : index
    %c2_57 = arith.constant 2 : index
    %c2_58 = arith.constant 2 : index
    %c0_59 = arith.constant 0 : index
    %57 = vector.load %arg2[%c0_56, %c2_57, %c2_58, %c0_59] : memref<1x18x18x4xf32, #tpu.memory_space<vmem>>, vector<1x16x16x4xf32>
    %58 = vector.shape_cast %57 : vector<1x16x16x4xf32> to vector<16x16x4xf32>
    %59 = vector.shape_cast %58 : vector<16x16x4xf32> to vector<256x4xf32>
    %c8 = arith.constant 8 : index
    %c0_60 = arith.constant 0 : index
    %c0_61 = arith.constant 0 : index
    %60 = vector.load %arg3[%c8, %c0_60, %c0_61] : memref<9x4x128xf32, #tpu.memory_space<vmem>>, vector<1x4x128xf32>
    %61 = vector.shape_cast %60 : vector<1x4x128xf32> to vector<4x128xf32>
    %cst_62 = arith.constant dense<0.000000e+00> : vector<256x128xf32>
    %62 = tpu.matmul %59, %61, %cst_62 {dimension_numbers = #tpu.dot_dimension_numbers<[1], [0], [0], [1], [0, 0, 1, 1], [], []>} : vector<256x4xf32>, vector<4x128xf32>, vector<256x128xf32> -> vector<256x128xf32>
    %63 = arith.addf %56, %62 : vector<256x128xf32>
    %c0_63 = arith.constant 0 : index
    %c0_64 = arith.constant 0 : index
    %64 = vector.load %arg4[%c0_63, %c0_64] : memref<1x128xf32, #tpu.memory_space<vmem>>, vector<1x128xf32>
    %65 = vector.broadcast %64 : vector<1x128xf32> to vector<256x128xf32>
    %66 = arith.addf %63, %65 : vector<256x128xf32>
    %cst_65 = arith.constant 0.000000e+00 : f32
    %67 = vector.broadcast %cst_65 : f32 to vector<256x128xf32>
    %68 = arith.maximumf %66, %67 : vector<256x128xf32>
    %c0_66 = arith.constant 0 : index
    %c0_67 = arith.constant 0 : index
    %c0_68 = arith.constant 0 : index
    %69 = vector.load %arg5[%c0_66, %c0_67, %c0_68] : memref<1x256x128xf32, #tpu.memory_space<vmem>>, vector<1x256x128xf32>
    %70 = vector.shape_cast %69 : vector<1x256x128xf32> to vector<256x128xf32>
    %71 = vector.shape_cast %68 : vector<256x128xf32> to vector<1x256x128xf32>
    tpu.vector_store %arg5[%c0_66, %c0_67, %c0_68], %71 {strides = array<i32>} : memref<1x256x128xf32, #tpu.memory_space<vmem>>, vector<1x256x128xf32>,
    return
  }
  func.func @transform_0(%arg0: i32, %arg1: i32) -> (i32, i32, i32, i32) {
    %c0_i32 = arith.constant 0 : i32
    %c0_i32_0 = arith.constant 0 : i32
    %c0_i32_1 = arith.constant 0 : i32
    %c0_i32_2 = arith.constant 0 : i32
    return %arg0, %c0_i32, %c0_i32_0, %c0_i32_1 : i32, i32, i32, i32
  }
  func.func @transform_1(%arg0: i32, %arg1: i32) -> (i32, i32, i32) {
    %c0_i32 = arith.constant 0 : i32
    %c0_i32_0 = arith.constant 0 : i32
    %c0_i32_1 = arith.constant 0 : i32
    return %c0_i32, %c0_i32_0, %arg1 : i32, i32, i32
  }
  func.func @transform_2(%arg0: i32, %arg1: i32) -> (i32, i32) {
    %c0_i32 = arith.constant 0 : i32
    %c0_i32_0 = arith.constant 0 : i32
    return %c0_i32, %arg1 : i32, i32
  }
  func.func @transform_3(%arg0: i32, %arg1: i32) -> (i32, i32, i32) {
    %c0_i32 = arith.constant 0 : i32
    %c0_i32_0 = arith.constant 0 : i32
    return %arg0, %c0_i32, %arg1 : i32, i32, i32
  }
}

</mosaic_0001>

<bundles_post_ra>
// kernel: tpu_custom_call.1
= control target key start
LH: loop header
LB: loop body
LE: loop exit
PB: predicated region body
PF: predicated region fallthrough
CT: control target
= control target key end

     0   :  { %8 = vsyncpa [#allocation3], 0  ;;  %s6689_s0 = inlined_call_operand.vmem [shape: f32[2,18,18,4], index: 0, kind: input, shape index: {}]   ;;  %s6690_s1 = inlined_call_operand.vmem [shape: f32[9,4,128], index: 1, kind: input, shape index: {}]   ;;  %s6691_s2 = inlined_call_operand.vmem [shape: f32[1,128], index: 2, kind: input, shape index: {}]   ;;  %s6692_s3 = inlined_call_operand.hbm [shape: f32[2,256,128], index: 3, kind: output, shape index: {}]  }
   0x1   :  { %10 = vsyncpa [#allocation3 + $0x1], 0  ;;  %s5559_s12 = smov 0   ;;  %s5561_s13 = smov 0  }
   0x2   :  { %s5563_s14 = smov 0   ;;  %s5565_s15 = smov 0  }
   0x3   :  { %s5567_s16 = smov 0   ;;  %s5569_s17 = smov 0  }
   0x4 LB: > { %s3880_s18 = sadd.s32 4294967295, %s5534_s17   ;;  %s3881_s19 = sadd.s32 4294967294, %s5534_s17   ;;  %s5534_s17 = sphi %s5569_s17, %s16_s17   ;;  %s5530_s16 = sphi %s5567_s16, %s6808_s16   ;;  %s5526_s15 = sphi %s5565_s15, %s6807_s15   ;;  %s5522_s14 = sphi %s5563_s14, %s6806_s14   ;;  %s5518_s13 = sphi %s5561_s13, %s6805_s13   ;;  %s5514_s12 = sphi %s5559_s12, %s6804_s12  }
   0x5   : > { %s28_s20 = sadd.s32 1, %s5530_s16  ;;  %s115_s21 = sadd.s32 1, %s5522_s14 }
   0x6   : > { %p30_p0 = scmp.ge.s32.totalorder %s28_s20, 2  ;;  %p125_p1 = scmp.ne.s32.totalorder %s5522_s14, %s5518_s13 }
   0x7   : > { %p126_p2 = scmp.eq.s32.totalorder %s3880_s18, 1  ;;  %p131_p3 = scmp.ne.s32.totalorder %s5518_s13, %s5514_s12 }
   0x8   : > { %s6810_s20 = smov (%p30_p0, %s28_s20), 0  ;;  %p132_p5 = scmp.eq.s32.totalorder %s3881_s19, 1 }
   0x9   : > { %p5599_p4 = por %p126_p2, %p125_p1  ;;  %s110_s23 = ssub.s32 %s5530_s16, %s6810_s20 }
   0xa   : > { %p3886_p6 = scmp.ge.s32.totalorder %s5534_s17, 1  ;;  %p113_p7 = scmp.eq.s32.totalorder %s110_s23, 0 }
   0xb   : > { %p5606_p8 = por %p132_p5, %p131_p3  ;;  %p171_p9 = scmp.lt.s32.totalorder %s5534_s17, 3 }
   0xc   : > { %s5612_s25 = scalar_select %p113_p7, %s5522_s14, %s115_s21  }
   0xd   : > { %p172_p10 = pnand %p3886_p6, %p171_p9 }
   0xf   : > { %175 = sbr.rel (%p172_p10) target bundleno = 549 (0x225), region = 32 }
  0x16   : > { %v3889_v0 = vld [vmem:[%s6690_s1 + $0x4] sm:$0xf]  ;;  %vm378_vm0 = vcmask 1043456   ;;  %v5620_v1 = vld [vmem:[%s6690_s1 + $0x10] sm:$0xf]  ;;  %p202_p11 = scmp.lt.s32.totalorder %s5526_s15, 1 }
  0x17   : > { %4690 = vmatprep.subr.msk.mxu1 %vm378_vm0, %v3889_v0  ;;  %4890 = vmatprep.subr.msk.mxu0 %vm378_vm0, %v5620_v1  ;;  %v246_v2 = vld [vmem:[%s6690_s1] sm:$0xf]  ;;  %v4154_v3 = vld [vmem:[%s6690_s1 + $0x14] sm:$0xf]  ;;  %vm281_vm1 = vcmask 31744   ;;  %s199_s5 = sand.u32 1, %s5518_s13  }
  0x18   : > { %4691 = vmatpush3.msk.msra.mxu1 %vm378_vm0, %v3889_v0  ;;  %4891 = vmatpush3.msk.msra.mxu0 %vm378_vm0, %v5620_v1  ;;  %s203_s7 = scalar_select %p202_p11, %s5526_s15, 1  ;;  %v4220_v9 = vld [vmem:[%s6690_s1 + $0x18] sm:$0xf]  ;;  %v5660_v10 = vld [vmem:[%s6690_s1 + $0x8] sm:$0xf] }
  0x19   : > { %4740 = vmatprep.subr.msk.mxu1 %vm378_vm0, %v246_v2  ;;  %4940 = vmatprep.subr.msk.mxu0 %vm378_vm0, %v4154_v3  ;;  %v5779_v28 = vld [vmem:[%s6690_s1 + $0x1c] sm:$0xf]  ;;  %v5942_v61 = vld [vmem:[%s6690_s1 + $0xc] sm:$0xf]  ;;  %s4392_s10 = sshll.u32 %s5526_s15, 12  ;;  %s6643_s15 = scalar_lea.sflag [#allocation3], %s199_s5 }
  0x1a   : > { %s5398_s8 = smul.u32 432, %s203_s7  ;;  %s6635_s21 = scalar_lea.hbm %s6692_s3, %s4392_s10 }
  0x1b   : > { %s5536_s26 = smov [#allocation2]  }
  0x1c   : > { %s5641_s11 = scalar_lea.vmem %s6689_s0, %s5398_s8  ;;  %s3887_s8 = sshll.u32 %s199_s5, 8 }
  0x1d   : > { %v247_v4 = vld [vmem:[%s5641_s11 + $0x1] sm:$0xff]  ;;  %v4056_v5 = vld [vmem:[%s5641_s11 + $0x19] sm:$0xff]  ;;  %v248_v6 = vld [vmem:[%s5641_s11 + $0x9] sm:$0xff]  ;;  %s6564_s9 = scalar_lea.vmem [#allocation2], %s3887_s8  ;;  %s5460_s27 = sshll.u32 %s5536_s26, 4  ;;  %s5461_s27 = int_to_ptr.vmem [resolvable:$false] %s5460_s27 }
  0x1e   : > { %4692 = vmatprep.mubr.msk.f32.mxu1 %vm281_vm1, %v247_v4  ;;  %4892 = vmatprep.mubr.msk.f32.mxu0 %vm281_vm1, %v4056_v5  ;;  %v4057_v7 = vld [vmem:[%s5641_s11 + $0x21] sm:$0xff]  ;;  %v5650_v8 = vld [vmem:[%s5641_s11 + $0x31] sm:$0xff]  ;;  %v5665_v11 = vld [vmem:[%s5641_s11 + $0x39] sm:$0xff]  ;;  %s5462_s28 = scalar_lea.vmem %s5461_s27, 8192 }
  0x1f   : > { %4693 = vmatmul.mubr.msk.f32.vlgmr.msra.gmra.mrb[0].mxu1 %vm281_vm1, %v248_v6  ;;  %4893 = vmatmul.mubr.msk.f32.vlgmr.msra.gmra.mrb[0].mxu0 %vm281_vm1, %v4057_v7  ;;  %v5671_v12 = vld [vmem:[%s5641_s11 + $0x49] sm:$0xff]  ;;  %v5684_v13 = vld [vmem:[%s5641_s11 + $0x51] sm:$0xff]  ;;  %v5687_v14 = vld [vmem:[%s5641_s11 + $0x61] sm:$0xff] }
  0x20   : > { %4741 = vmatpush3.msk.msra.mxu1 %vm378_vm0, %v246_v2  ;;  %4941 = vmatpush3.msk.msra.mxu0 %vm378_vm0, %v4154_v3  ;;  %v5698_v15 = vld [vmem:[%s5641_s11 + $0x69] sm:$0xff]  ;;  %v5701_v16 = vld [vmem:[%s5641_s11 + $0x79] sm:$0xff]  ;;  %v5712_v17 = vld [vmem:[%s5641_s11 + $0x81] sm:$0xff] }
  0x21   : > { %4695 = vmatprep.mubr.msk.f32.mxu1 %vm281_vm1, %v4056_v5  ;;  %4895 = vmatprep.mubr.msk.f32.mxu0 %vm281_vm1, %v5650_v8  ;;  %v5715_v18 = vld [vmem:[%s5641_s11 + $0x91] sm:$0xff]  ;;  %v5726_v19 = vld [vmem:[%s5641_s11 + $0x99] sm:$0xff]  ;;  %v5729_v20 = vld [vmem:[%s5641_s11 + $0xa9] sm:$0xff] }
  0x22   : > { %4990 = vmatprep.subr.msk.mxu0 %vm378_vm0, %v4220_v9  ;;  %4790 = vmatprep.subr.msk.mxu1 %vm378_vm0, %v5660_v10  ;;  %v5740_v21 = vld [vmem:[%s5641_s11 + $0xb1] sm:$0xff]  ;;  %v5743_v22 = vld [vmem:[%s5641_s11 + $0xc1] sm:$0xff]  ;;  %v5754_v23 = vld [vmem:[%s5641_s11 + $0xc9] sm:$0xff] }
  0x23   : > { %4696 = vmatmul.mubr.msk.f32.gmra.mrb[2].mxu1 %vm281_vm1, %v4057_v7  ;;  %4896 = vmatmul.mubr.msk.f32.gmra.mrb[2].mxu0 %vm281_vm1, %v5665_v11  ;;  %v5757_v24 = vld [vmem:[%s5641_s11 + $0x1a] sm:$0xff]  ;;  %v5768_v25 = vld [vmem:[%s5641_s11 + $0x22] sm:$0xff]  ;;  %v5774_v27 = vld [vmem:[%s5641_s11 + $0x32] sm:$0xff] }
  0x24   : > { %4698 = vmatprep.mubr.msk.f32.mxu1 %vm281_vm1, %v5650_v8  ;;  %4898 = vmatprep.mubr.msk.f32.mxu0 %vm281_vm1, %v5671_v12  ;;  %v5771_v26 = vld [vmem:[%s5641_s11 + $0xd9] sm:$0xff]  ;;  %v5789_v29 = vld [vmem:[%s5641_s11 + $0xe1] sm:$0xff]  ;;  %v5797_v31 = vld [vmem:[%s5641_s11 + $0xf1] sm:$0xff] }
  0x25   : > { %6740 = vst [vmem:[#allocation5_spill] sm:$0xff] %v5789_v29  ;;  %v5792_v30 = vld [vmem:[%s5641_s11 + $0x3a] sm:$0xff]  ;;  %6741 = vst [vmem:[#allocation6_spill] sm:$0xff] %v5797_v31  ;;  %v5800_v32 = vld [vmem:[%s5641_s11 + $0x4a] sm:$0xff] }
  0x26   : > { %v5813_v33 = vld [vmem:[%s5641_s11 + $0xf9] sm:$0xff]  ;;  %v5819_v35 = vld [vmem:[%s5641_s11 + $0x109] sm:$0xff]  ;;  %v5833_v37 = vld [vmem:[%s5641_s11 + $0x111] sm:$0xff] }
  0x27   : > { %4699 = vmatmul.mubr.msk.f32.gmra.mrb[4].mxu1 %vm281_vm1, %v5665_v11  ;;  %4899 = vmatmul.mubr.msk.f32.gmra.mrb[4].mxu0 %vm281_vm1, %v5684_v13  ;;  %6742 = vst [vmem:[#allocation7_spill] sm:$0xff] %v5813_v33  ;;  %v5816_v34 = vld [vmem:[%s5641_s11 + $0x52] sm:$0xff]  ;;  %6743 = vst [vmem:[#allocation8_spill] sm:$0xff] %v5819_v35  ;;  %v5822_v36 = vld [vmem:[%s5641_s11 + $0x62] sm:$0xff] }
  0x28   : > { %4701 = vmatprep.mubr.msk.f32.mxu1 %vm281_vm1, %v5671_v12  ;;  %4901 = vmatprep.mubr.msk.f32.mxu0 %vm281_vm1, %v5687_v14  ;;  %6744 = vst [vmem:[#allocation9_spill] sm:$0xff] %v5833_v37  ;;  %v5836_v38 = vld [vmem:[%s5641_s11 + $0x6a] sm:$0xff]  ;;  %v5839_v39 = vld [vmem:[%s5641_s11 + $0x121] sm:$0xff]  ;;  %v5859_v43 = vld [vmem:[%s5641_s11 + $0x139] sm:$0xff] }
  0x29   : > { %6745 = vst [vmem:[#allocation10_spill] sm:$0xff] %v5839_v39  ;;  %v5842_v40 = vld [vmem:[%s5641_s11 + $0x7a] sm:$0xff]  ;;  %v5853_v41 = vld [vmem:[%s5641_s11 + $0x129] sm:$0xff]  ;;  %6747 = vst [vmem:[#allocation12_spill] sm:$0xff] %v5859_v43 }
  0x2a   : > { %6746 = vst [vmem:[#allocation11_spill] sm:$0xff] %v5853_v41  ;;  %v5856_v42 = vld [vmem:[%s5641_s11 + $0x82] sm:$0xff]  ;;  %v5862_v44 = vld [vmem:[%s5641_s11 + $0x92] sm:$0xff]  ;;  %v5876_v46 = vld [vmem:[%s5641_s11 + $0x9a] sm:$0xff] }
  0x2b   : > { %4702 = vmatmul.mubr.msk.f32.gmra.mrb[6].mxu1 %vm281_vm1, %v5684_v13  ;;  %4902 = vmatmul.mubr.msk.f32.gmra.mrb[6].mxu0 %vm281_vm1, %v5698_v15  ;;  %v5873_v45 = vld [vmem:[%s5641_s11 + $0x141] sm:$0xff]  ;;  %v5879_v47 = vld [vmem:[%s5641_s11 + $0x151] sm:$0xff]  ;;  %v5893_v49 = vld [vmem:[%s5641_s11 + $0x159] sm:$0xff] }
  0x2c   : > { %4704 = vmatprep.mubr.msk.f32.mxu1 %vm281_vm1, %v5687_v14  ;;  %4904 = vmatprep.mubr.msk.f32.mxu0 %vm281_vm1, %v5701_v16  ;;  %6748 = vst [vmem:[#allocation13_spill] sm:$0xff] %v5873_v45  ;;  %6749 = vst [vmem:[#allocation14_spill] sm:$0xff] %v5879_v47  ;;  %v5882_v48 = vld [vmem:[%s5641_s11 + $0xaa] sm:$0xff]  ;;  %v5896_v50 = vld [vmem:[%s5641_s11 + $0xb2] sm:$0xff] }
  0x2d   : > { %6750 = vst [vmem:[#allocation15_spill] sm:$0xff] %v5893_v49  ;;  %v5899_v51 = vld [vmem:[%s5641_s11 + $0x169] sm:$0xff]  ;;  %v5913_v53 = vld [vmem:[%s5641_s11 + $0x171] sm:$0xff]  ;;  %v214_v55 = vld [vmem:[%s5641_s11] sm:$0xff] }
  0x2e   : > { %6751 = vst [vmem:[#allocation16_spill] sm:$0xff] %v5899_v51  ;;  %v5902_v52 = vld [vmem:[%s5641_s11 + $0xc2] sm:$0xff]  ;;  %6752 = vst [vmem:[#allocation17_spill] sm:$0xff] %v5913_v53  ;;  %v5916_v54 = vld [vmem:[%s5641_s11 + $0xca] sm:$0xff] }
  0x2f   : > { %4705 = vmatmul.mubr.msk.f32.gmra.mrb[8].mxu1 %vm281_vm1, %v5698_v15  ;;  %4905 = vmatmul.mubr.msk.f32.gmra.mrb[8].mxu0 %vm281_vm1, %v5712_v17  ;;  %v5920_v56 = vld [vmem:[%s5641_s11 + $0xda] sm:$0xff]  ;;  %v215_v57 = vld [vmem:[%s5641_s11 + $0x8] sm:$0xff]  ;;  %v5937_v60 = vld [vmem:[%s5641_s11 + $0xf2] sm:$0xff] }
  0x30   : > { %4707 = vmatprep.mubr.msk.f32.mxu1 %vm281_vm1, %v5701_v16  ;;  %4907 = vmatprep.mubr.msk.f32.mxu0 %vm281_vm1, %v5715_v18  ;;  %v5931_v58 = vld [vmem:[%s5641_s11 + $0xe2] sm:$0xff]  ;;  %v5934_v59 = vld [vmem:[%s5641_s11 + $0x18] sm:$0xff]  ;;  %v5960_v0 = vld [vmem:[%s5641_s11 + $0x30] sm:$0xff] }
  0x31   : > { %6753 = vst [vmem:[#allocation18_spill] sm:$0xff] %v5934_v59  ;;  %v5952_v62 = vld [vmem:[%s5641_s11 + $0x20] sm:$0xff]  ;;  %6755 = vst [vmem:[#allocation20_spill] sm:$0xff] %v5960_v0  ;;  %v5963_v2 = vld [vmem:[%s5641_s11 + $0x10a] sm:$0xff] }
  0x32   : > { %6754 = vst [vmem:[#allocation19_spill] sm:$0xff] %v5952_v62  ;;  %v5955_v63 = vld [vmem:[%s5641_s11 + $0xfa] sm:$0xff]  ;;  %v5979_v4 = vld [vmem:[%s5641_s11 + $0x112] sm:$0xff]  ;;  %v5982_v5 = vld [vmem:[%s5641_s11 + $0x48] sm:$0xff] }
  0x33   : > { %4708 = vmatmul.mubr.msk.f32.gmra.mrb[10].mxu1 %vm281_vm1, %v5712_v17  ;;  %4908 = vmatmul.mubr.msk.f32.gmra.mrb[10].mxu0 %vm281_vm1, %v5726_v19  ;;  %v5976_v3 = vld [vmem:[%s5641_s11 + $0x38] sm:$0xff]  ;;  %6757 = vst [vmem:[#allocation22_spill] sm:$0xff] %v5982_v5  ;;  %v5985_v6 = vld [vmem:[%s5641_s11 + $0x122] sm:$0xff]  ;;  %v5996_v7 = vld [vmem:[%s5641_s11 + $0x50] sm:$0xff] }
  0x34   : > { %4710 = vmatprep.mubr.msk.f32.mxu1 %vm281_vm1, %v5715_v18  ;;  %4910 = vmatprep.mubr.msk.f32.mxu0 %vm281_vm1, %v5729_v20  ;;  %6756 = vst [vmem:[#allocation21_spill] sm:$0xff] %v5976_v3  ;;  %6758 = vst [vmem:[#allocation23_spill] sm:$0xff] %v5996_v7 }
  0x37   : > { %4711 = vmatmul.mubr.msk.f32.gmra.mrb[12].mxu1 %vm281_vm1, %v5726_v19  ;;  %4911 = vmatmul.mubr.msk.f32.gmra.mrb[12].mxu0 %vm281_vm1, %v5740_v21 }
  0x38   : > { %4713 = vmatprep.mubr.msk.f32.mxu1 %vm281_vm1, %v5729_v20  ;;  %4913 = vmatprep.mubr.msk.f32.mxu0 %vm281_vm1, %v5743_v22 }
  0x3b   : > { %4714 = vmatmul.mubr.msk.f32.gmra.mrb[14].mxu1 %vm281_vm1, %v5740_v21  ;;  %4914 = vmatmul.mubr.msk.f32.gmra.mrb[14].mxu0 %vm281_vm1, %v5754_v23 }
  0x3c   : > { %4716 = vmatprep.mubr.msk.f32.mxu1 %vm281_vm1, %v5743_v22  ;;  %4942 = vmatprep.mubr.msk.f32.mxu0 %vm281_vm1, %v5757_v24 }
  0x3f   : > { %4717 = vmatmul.mubr.msk.f32.gmra.mrb[16].mxu1 %vm281_vm1, %v5754_v23  ;;  %4943 = vmatmul.mubr.msk.f32.vlgmr.msra.gmra.mrb[0].mxu0 %vm281_vm1, %v5768_v25 }
  0x40   : > { %4991 = vmatpush3.msk.msra.mxu0 %vm378_vm0, %v4220_v9  ;;  %4719 = vmatprep.mubr.msk.f32.mxu1 %vm281_vm1, %v5771_v26  ;;  %v5999_v9 = vld [vmem:[%s5641_s11 + $0x12a] sm:$0xff] }
  0x41   : > { %4945 = vmatprep.mubr.msk.f32.mxu0 %vm281_vm1, %v5774_v27  ;;  %5040 = vmatprep.subr.msk.mxu0 %vm378_vm0, %v5779_v28 }
  0x43   : > { %4720 = vmatmul.mubr.msk.f32.gmra.mrb[18].mxu1 %vm281_vm1, %v5789_v29  ;;  %4946 = vmatmul.mubr.msk.f32.gmra.mrb[2].mxu0 %vm281_vm1, %v5792_v30  ;;  %v6096_v29 = vld [vmem:[%s5641_s11 + $0xd8] sm:$0xff] }
  0x44   : > { %4722 = vmatprep.mubr.msk.f32.mxu1 %vm281_vm1, %v5797_v31  ;;  %4948 = vmatprep.mubr.msk.f32.mxu0 %vm281_vm1, %v5800_v32  ;;  %v6079_v31 = vld [vmem:[%s5641_s11 + $0x18a] sm:$0xff] }
  0x45   : > { %6769 = vst [vmem:[#allocation34_spill] sm:$0xff] %v6079_v31 }
  0x47   : > { %4723 = vmatmul.mubr.msk.f32.gmra.mrb[20].mxu1 %vm281_vm1, %v5813_v33  ;;  %4949 = vmatmul.mubr.msk.f32.gmra.mrb[4].mxu0 %vm281_vm1, %v5816_v34  ;;  %v6065_v33 = vld [vmem:[%s5641_s11 + $0x182] sm:$0xff] }
  0x48   : > { %4725 = vmatprep.mubr.msk.f32.mxu1 %vm281_vm1, %v5819_v35  ;;  %4951 = vmatprep.mubr.msk.f32.mxu0 %vm281_vm1, %v5822_v36  ;;  %v6062_v35 = vld [vmem:[%s5641_s11 + $0xa8] sm:$0xff]  ;;  %6767 = vst [vmem:[#allocation32_spill] sm:$0xff] %v6065_v33 }
  0x49   : > { %6766 = vst [vmem:[#allocation31_spill] sm:$0xff] %v6062_v35 }
  0x4b   : > { %4726 = vmatmul.mubr.msk.f32.gmra.mrb[22].mxu1 %vm281_vm1, %v5833_v37  ;;  %4952 = vmatmul.mubr.msk.f32.gmra.mrb[6].mxu0 %vm281_vm1, %v5836_v38  ;;  %v6059_v37 = vld [vmem:[%s5641_s11 + $0x172] sm:$0xff] }
  0x4c   : > { %4728 = vmatprep.mubr.msk.f32.mxu1 %vm281_vm1, %v5839_v39  ;;  %4954 = vmatprep.mubr.msk.f32.mxu0 %vm281_vm1, %v5842_v40  ;;  %v6056_v39 = vld [vmem:[%s5641_s11 + $0x98] sm:$0xff]  ;;  %6765 = vst [vmem:[#allocation30_spill] sm:$0xff] %v6059_v37 }
  0x4d   : > { %6764 = vst [vmem:[#allocation29_spill] sm:$0xff] %v6056_v39 }
  0x4f   : > { %4729 = vmatmul.mubr.msk.f32.gmra.mrb[24].mxu1 %vm281_vm1, %v5853_v41  ;;  %4955 = vmatmul.mubr.msk.f32.gmra.mrb[8].mxu0 %vm281_vm1, %v5856_v42  ;;  %v6045_v41 = vld [vmem:[%s5641_s11 + $0x16a] sm:$0xff] }
  0x50   : > { %4731 = vmatprep.mubr.msk.f32.mxu1 %vm281_vm1, %v5859_v43  ;;  %4957 = vmatprep.mubr.msk.f32.mxu0 %vm281_vm1, %v5862_v44  ;;  %v6042_v43 = vld [vmem:[%s5641_s11 + $0x90] sm:$0xff] }
  0x51   : > { %6763 = vst [vmem:[#allocation28_spill] sm:$0xff] %v6042_v43 }
  0x53   : > { %4732 = vmatmul.mubr.msk.f32.gmra.mrb[26].mxu1 %vm281_vm1, %v5873_v45  ;;  %4958 = vmatmul.mubr.msk.f32.gmra.mrb[10].mxu0 %vm281_vm1, %v5876_v46  ;;  %v6039_v45 = vld [vmem:[%s5641_s11 + $0x15a] sm:$0xff] }
  0x54   : > { %4734 = vmatprep.mubr.msk.f32.mxu1 %vm281_vm1, %v5879_v47  ;;  %4960 = vmatprep.mubr.msk.f32.mxu0 %vm281_vm1, %v5882_v48  ;;  %v6036_v47 = vld [vmem:[%s5641_s11 + $0x80] sm:$0xff] }
  0x55   : > { %6762 = vst [vmem:[#allocation27_spill] sm:$0xff] %v6036_v47 }
  0x57   : > { %4735 = vmatmul.mubr.msk.f32.gmra.mrb[28].mxu1 %vm281_vm1, %v5893_v49  ;;  %4961 = vmatmul.mubr.msk.f32.gmra.mrb[12].mxu0 %vm281_vm1, %v5896_v50  ;;  %v6025_v49 = vld [vmem:[%s5641_s11 + $0x152] sm:$0xff] }
  0x58   : > { %4737 = vmatprep.mubr.msk.f32.mxu1 %vm281_vm1, %v5899_v51  ;;  %4963 = vmatprep.mubr.msk.f32.mxu0 %vm281_vm1, %v5902_v52  ;;  %v6022_v51 = vld [vmem:[%s5641_s11 + $0x78] sm:$0xff] }
  0x59   : > { %6761 = vst [vmem:[#allocation26_spill] sm:$0xff] %v6022_v51 }
  0x5b   : > { %4738 = vmatmul.mubr.msk.f32.gmra.mrb[30].mxu1 %vm281_vm1, %v5913_v53  ;;  %4964 = vmatmul.mubr.msk.f32.gmra.mrb[14].mxu0 %vm281_vm1, %v5916_v54  ;;  %v6019_v53 = vld [vmem:[%s5641_s11 + $0x142] sm:$0xff] }
  0x5c   : > { %4742 = vmatprep.mubr.msk.f32.mxu1 %vm281_vm1, %v214_v55  ;;  %4966 = vmatprep.mubr.msk.f32.mxu0 %vm281_vm1, %v5920_v56  ;;  %v6005_v55 = vld [vmem:[%s5641_s11 + $0x13a] sm:$0xff] }
  0x5f   : > { %4743 = vmatmul.mubr.msk.f32.vlgmr.msra.gmra.mrb[0].mxu1 %vm281_vm1, %v215_v57  ;;  %4967 = vmatmul.mubr.msk.f32.gmra.mrb[16].mxu0 %vm281_vm1, %v5931_v58  ;;  %v6016_v57 = vld [vmem:[%s5641_s11 + $0x68] sm:$0xff] }
  0x60   : > { %4791 = vmatpush3.msk.msra.mxu1 %vm378_vm0, %v5660_v10  ;;  %4745 = vmatprep.mubr.msk.f32.mxu1 %vm281_vm1, %v5934_v59  ;;  %v6002_v10 = vld [vmem:[%s5641_s11 + $0x60] sm:$0xff]  ;;  %6760 = vst [vmem:[#allocation25_spill] sm:$0xff] %v6016_v57 }
  0x61   : > { %4969 = vmatprep.mubr.msk.f32.mxu0 %vm281_vm1, %v5937_v60  ;;  %4840 = vmatprep.subr.msk.mxu1 %vm378_vm0, %v5942_v61  ;;  %6759 = vst [vmem:[#allocation24_spill] sm:$0xff] %v6002_v10  ;;  %v6082_v59 = vld [vmem:[%s5641_s11 + $0xc0] sm:$0xff] }
  0x63   : > { %4746 = vmatmul.mubr.msk.f32.gmra.mrb[2].mxu1 %vm281_vm1, %v5952_v62  ;;  %4970 = vmatmul.mubr.msk.f32.gmra.mrb[18].mxu0 %vm281_vm1, %v5955_v63  ;;  %v6076_v62 = vld [vmem:[%s5641_s11 + $0xb0] sm:$0xff] }
  0x64   : > { %4748 = vmatprep.mubr.msk.f32.mxu1 %vm281_vm1, %v5960_v0  ;;  %4972 = vmatprep.mubr.msk.f32.mxu0 %vm281_vm1, %v5963_v2  ;;  %6768 = vst [vmem:[#allocation33_spill] sm:$0xff] %v6076_v62 }
  0x67   : > { %4749 = vmatmul.mubr.msk.f32.gmra.mrb[4].mxu1 %vm281_vm1, %v5976_v3  ;;  %4973 = vmatmul.mubr.msk.f32.gmra.mrb[20].mxu0 %vm281_vm1, %v5979_v4 }
  0x68   : > { %4751 = vmatprep.mubr.msk.f32.mxu1 %vm281_vm1, %v5982_v5  ;;  %4975 = vmatprep.mubr.msk.f32.mxu0 %vm281_vm1, %v5985_v6 }
  0x6b   : > { %4752 = vmatmul.mubr.msk.f32.gmra.mrb[6].mxu1 %vm281_vm1, %v5996_v7  ;;  %4976 = vmatmul.mubr.msk.f32.gmra.mrb[22].mxu0 %vm281_vm1, %v5999_v9 }
  0x6c   : > { %4754 = vmatprep.mubr.msk.f32.mxu1 %vm281_vm1, %v6002_v10  ;;  %4978 = vmatprep.mubr.msk.f32.mxu0 %vm281_vm1, %v6005_v55 }
  0x6f   : > { %4755 = vmatmul.mubr.msk.f32.gmra.mrb[8].mxu1 %vm281_vm1, %v6016_v57  ;;  %4979 = vmatmul.mubr.msk.f32.gmra.mrb[24].mxu0 %vm281_vm1, %v6019_v53 }
  0x70   : > { %4757 = vmatprep.mubr.msk.f32.mxu1 %vm281_vm1, %v6022_v51  ;;  %4981 = vmatprep.mubr.msk.f32.mxu0 %vm281_vm1, %v6025_v49 }
  0x73   : > { %4758 = vmatmul.mubr.msk.f32.gmra.mrb[10].mxu1 %vm281_vm1, %v6036_v47  ;;  %4982 = vmatmul.mubr.msk.f32.gmra.mrb[26].mxu0 %vm281_vm1, %v6039_v45 }
  0x74   : > { %4760 = vmatprep.mubr.msk.f32.mxu1 %vm281_vm1, %v6042_v43  ;;  %4984 = vmatprep.mubr.msk.f32.mxu0 %vm281_vm1, %v6045_v41 }
  0x77   : > { %4761 = vmatmul.mubr.msk.f32.gmra.mrb[12].mxu1 %vm281_vm1, %v6056_v39  ;;  %4985 = vmatmul.mubr.msk.f32.gmra.mrb[28].mxu0 %vm281_vm1, %v6059_v37  ;;  %v6101_v37 = vld [vmem:[%s6690_s1 + $0x20] sm:$0xf] }
  0x78   : > { %4763 = vmatprep.mubr.msk.f32.mxu1 %vm281_vm1, %v6062_v35  ;;  %4987 = vmatprep.mubr.msk.f32.mxu0 %vm281_vm1, %v6065_v33  ;;  %v6093_v33 = vld [vmem:[%s5641_s11 + $0xc8] sm:$0xff] }
  0x79   : > { %6770 = vst [vmem:[#allocation35_spill] sm:$0xff] %v6093_v33 }
  0x7b   : > { %4764 = vmatmul.mubr.msk.f32.gmra.mrb[14].mxu1 %vm281_vm1, %v6076_v62  ;;  %4988 = vmatmul.mubr.msk.f32.gmra.mrb[30].mxu0 %vm281_vm1, %v6079_v31  ;;  %v6112_v31 = vld [vmem:[%s5641_s11 + $0xe0] sm:$0xff] }
  0x7c   : > { %4766 = vmatprep.mubr.msk.f32.mxu1 %vm281_vm1, %v6082_v59  ;;  %4992 = vmatprep.mubr.msk.f32.mxu0 %vm281_vm1, %v5960_v0  ;;  %v6117_v0 = vld [vmem:[%s5641_s11 + $0xf0] sm:$0xff] }
  0x7f   : > { %4767 = vmatmul.mubr.msk.f32.gmra.mrb[16].mxu1 %vm281_vm1, %v6093_v33  ;;  %4993 = vmatmul.mubr.msk.f32.vlgmr.msra.gmra.mrb[0].mxu0 %vm281_vm1, %v5976_v3  ;;  %v931_v3 = vld [vmem:[%s5641_s11 + $0x2] sm:$0xff] }
  0x80   : > { %5041 = vmatpush3.msk.msra.mxu0 %vm378_vm0, %v5779_v28  ;;  %4769 = vmatprep.mubr.msk.f32.mxu1 %vm281_vm1, %v6096_v29  ;;  %v6130_v28 = vld [vmem:[%s5641_s11 + $0xf8] sm:$0xff] }
  0x81   : > { %4995 = vmatprep.mubr.msk.f32.mxu0 %vm281_vm1, %v5982_v5  ;;  %5090 = vmatprep.subr.msk.mxu0 %vm378_vm0, %v6101_v37  ;;  %v6133_v5 = vld [vmem:[%s5641_s11 + $0x108] sm:$0xff] }
  0x83   : > { %4770 = vmatmul.mubr.msk.f32.gmra.mrb[18].mxu1 %vm281_vm1, %v6112_v31  ;;  %4996 = vmatmul.mubr.msk.f32.gmra.mrb[2].mxu0 %vm281_vm1, %v5996_v7  ;;  %v6144_v7 = vld [vmem:[%s5641_s11 + $0x110] sm:$0xff] }
  0x84   : > { %4772 = vmatprep.mubr.msk.f32.mxu1 %vm281_vm1, %v6117_v0  ;;  %4998 = vmatprep.mubr.msk.f32.mxu0 %vm281_vm1, %v6002_v10  ;;  %v6147_v10 = vld [vmem:[%s5641_s11 + $0x120] sm:$0xff] }
  0x87   : > { %4773 = vmatmul.mubr.msk.f32.gmra.mrb[20].mxu1 %vm281_vm1, %v6130_v28  ;;  %4999 = vmatmul.mubr.msk.f32.gmra.mrb[4].mxu0 %vm281_vm1, %v6016_v57  ;;  %v6158_v57 = vld [vmem:[%s5641_s11 + $0x128] sm:$0xff] }
  0x88   : > { %4775 = vmatprep.mubr.msk.f32.mxu1 %vm281_vm1, %v6133_v5  ;;  %5001 = vmatprep.mubr.msk.f32.mxu0 %vm281_vm1, %v6022_v51  ;;  %v6161_v51 = vld [vmem:[%s5641_s11 + $0x138] sm:$0xff] }
  0x8b   : > { %4776 = vmatmul.mubr.msk.f32.gmra.mrb[22].mxu1 %vm281_vm1, %v6144_v7  ;;  %5002 = vmatmul.mubr.msk.f32.gmra.mrb[6].mxu0 %vm281_vm1, %v6036_v47  ;;  %v6172_v47 = vld [vmem:[%s5641_s11 + $0x140] sm:$0xff] }
  0x8c   : > { %4778 = vmatprep.mubr.msk.f32.mxu1 %vm281_vm1, %v6147_v10  ;;  %5004 = vmatprep.mubr.msk.f32.mxu0 %vm281_vm1, %v6042_v43  ;;  %v6175_v43 = vld [vmem:[%s5641_s11 + $0x150] sm:$0xff] }
  0x8f   : > { %4779 = vmatmul.mubr.msk.f32.gmra.mrb[24].mxu1 %vm281_vm1, %v6158_v57  ;;  %5005 = vmatmul.mubr.msk.f32.gmra.mrb[8].mxu0 %vm281_vm1, %v6056_v39  ;;  %v6186_v39 = vld [vmem:[%s5641_s11 + $0x158] sm:$0xff] }
  0x90   : > { %4781 = vmatprep.mubr.msk.f32.mxu1 %vm281_vm1, %v6161_v51  ;;  %5007 = vmatprep.mubr.msk.f32.mxu0 %vm281_vm1, %v6062_v35  ;;  %v6189_v35 = vld [vmem:[%s5641_s11 + $0x168] sm:$0xff] }
  0x93   : > { %4782 = vmatmul.mubr.msk.f32.gmra.mrb[26].mxu1 %vm281_vm1, %v6172_v47  ;;  %5008 = vmatmul.mubr.msk.f32.gmra.mrb[10].mxu0 %vm281_vm1, %v6076_v62  ;;  %v6200_v62 = vld [vmem:[%s5641_s11 + $0x170] sm:$0xff] }
  0x94   : > { %4784 = vmatprep.mubr.msk.f32.mxu1 %vm281_vm1, %v6175_v43  ;;  %5010 = vmatprep.mubr.msk.f32.mxu0 %vm281_vm1, %v6082_v59 }
  0x97   : > { %4785 = vmatmul.mubr.msk.f32.gmra.mrb[28].mxu1 %vm281_vm1, %v6186_v39  ;;  %5011 = vmatmul.mubr.msk.f32.gmra.mrb[12].mxu0 %vm281_vm1, %v6093_v33  ;;  %v932_v33 = vld [vmem:[%s5641_s11 + $0xa] sm:$0xff] }
  0x98   : > { %4787 = vmatprep.mubr.msk.f32.mxu1 %vm281_vm1, %v6189_v35  ;;  %5013 = vmatprep.mubr.msk.f32.mxu0 %vm281_vm1, %v6096_v29 }
  0x9b   : > { %4788 = vmatmul.mubr.msk.f32.gmra.mrb[30].mxu1 %vm281_vm1, %v6200_v62  ;;  %5014 = vmatmul.mubr.msk.f32.gmra.mrb[14].mxu0 %vm281_vm1, %v6112_v31 }
  0x9c   : > { %4792 = vmatprep.mubr.msk.f32.mxu1 %vm281_vm1, %v931_v3  ;;  %5016 = vmatprep.mubr.msk.f32.mxu0 %vm281_vm1, %v6117_v0  ;;  %v6787_v3 = vld [vmem:[#allocation25_spill] sm:$0xff] }
  0x9f   : > { %4793 = vmatmul.mubr.msk.f32.vlgmr.msra.gmra.mrb[0].mxu1 %vm281_vm1, %v932_v33  ;;  %5017 = vmatmul.mubr.msk.f32.gmra.mrb[16].mxu0 %vm281_vm1, %v6130_v28  ;;  %v4218_v33 = vld [vmem:[%s5641_s11 + $0x198] sm:$0xff] }
  0xa0   : > { %4841 = vmatpush3.msk.msra.mxu1 %vm378_vm0, %v5942_v61  ;;  %4795 = vmatprep.mubr.msk.f32.mxu1 %vm281_vm1, %v5757_v24  ;;  %v6255_v24 = vld [vmem:[%s5641_s11 + $0x180] sm:$0xff] }
  0xa1   : > { %5019 = vmatprep.mubr.msk.f32.mxu0 %vm281_vm1, %v6133_v5  ;;  %5140 = vmatprep.subr.msk.mxu1 %vm378_vm0, %v5620_v1  ;;  %v4219_v61 = vld [vmem:[%s5641_s11 + $0x1a0] sm:$0xff] }
  0xa3   : > { %4796 = vmatmul.mubr.msk.f32.gmra.mrb[2].mxu1 %vm281_vm1, %v5768_v25  ;;  %5020 = vmatmul.mubr.msk.f32.gmra.mrb[18].mxu0 %vm281_vm1, %v6144_v7  ;;  %v6266_v25 = vld [vmem:[%s5641_s11 + $0x188] sm:$0xff] }
  0xa4   : > { %4798 = vmatprep.mubr.msk.f32.mxu1 %vm281_vm1, %v5774_v27  ;;  %5022 = vmatprep.mubr.msk.f32.mxu0 %vm281_vm1, %v6147_v10 }
  0xa7   : > { %4799 = vmatmul.mubr.msk.f32.gmra.mrb[4].mxu1 %vm281_vm1, %v5792_v30  ;;  %5023 = vmatmul.mubr.msk.f32.gmra.mrb[20].mxu0 %vm281_vm1, %v6158_v57 }
  0xa8   : > { %4801 = vmatprep.mubr.msk.f32.mxu1 %vm281_vm1, %v5800_v32  ;;  %5025 = vmatprep.mubr.msk.f32.mxu0 %vm281_vm1, %v6161_v51 }
  0xab   : > { %4802 = vmatmul.mubr.msk.f32.gmra.mrb[6].mxu1 %vm281_vm1, %v5816_v34  ;;  %5026 = vmatmul.mubr.msk.f32.gmra.mrb[22].mxu0 %vm281_vm1, %v6172_v47 }
  0xac   : > { %4804 = vmatprep.mubr.msk.f32.mxu1 %vm281_vm1, %v5822_v36  ;;  %5028 = vmatprep.mubr.msk.f32.mxu0 %vm281_vm1, %v6175_v43 }
  0xaf   : > { %4805 = vmatmul.mubr.msk.f32.gmra.mrb[8].mxu1 %vm281_vm1, %v5836_v38  ;;  %5029 = vmatmul.mubr.msk.f32.gmra.mrb[24].mxu0 %vm281_vm1, %v6186_v39 }
  0xb0   : > { %4807 = vmatprep.mubr.msk.f32.mxu1 %vm281_vm1, %v5842_v40  ;;  %5031 = vmatprep.mubr.msk.f32.mxu0 %vm281_vm1, %v6189_v35 }
  0xb3   : > { %4808 = vmatmul.mubr.msk.f32.gmra.mrb[10].mxu1 %vm281_vm1, %v5856_v42  ;;  %5032 = vmatmul.mubr.msk.f32.gmra.mrb[26].mxu0 %vm281_vm1, %v6200_v62 }
  0xb4   : > { %4810 = vmatprep.mubr.msk.f32.mxu1 %vm281_vm1, %v5862_v44  ;;  %5034 = vmatprep.mubr.msk.f32.mxu0 %vm281_vm1, %v6255_v24 }
  0xb7   : > { %4811 = vmatmul.mubr.msk.f32.gmra.mrb[12].mxu1 %vm281_vm1, %v5876_v46  ;;  %5035 = vmatmul.mubr.msk.f32.gmra.mrb[28].mxu0 %vm281_vm1, %v6266_v25 }
  0xb8   : > { %4813 = vmatprep.mubr.msk.f32.mxu1 %vm281_vm1, %v5882_v48  ;;  %5037 = vmatprep.mubr.msk.f32.mxu0 %vm281_vm1, %v4218_v33  ;;  %v6788_v33 = vld [vmem:[#allocation13_spill] sm:$0xff] }
  0xbb   : > { %4814 = vmatmul.mubr.msk.f32.gmra.mrb[14].mxu1 %vm281_vm1, %v5896_v50  ;;  %5038 = vmatmul.mubr.msk.f32.gmra.mrb[30].mxu0 %vm281_vm1, %v4219_v61  ;;  %v6789_v61 = vld [vmem:[#allocation26_spill] sm:$0xff] }
  0xbc   : > { %4816 = vmatprep.mubr.msk.f32.mxu1 %vm281_vm1, %v5902_v52  ;;  %5042 = vmatprep.mubr.msk.f32.mxu0 %vm281_vm1, %v5650_v8  ;;  %v6771_v8 = vld [vmem:[#allocation30_spill] sm:$0xff] }
  0xbf   : > { %4817 = vmatmul.mubr.msk.f32.gmra.mrb[16].mxu1 %vm281_vm1, %v5916_v54  ;;  %5043 = vmatmul.mubr.msk.f32.vlgmr.msra.gmra.mrb[0].mxu0 %vm281_vm1, %v5665_v11  ;;  %v6772_v11 = vld [vmem:[#allocation5_spill] sm:$0xff] }
  0xc0   : > { %5091 = vmatpush3.msk.msra.mxu0 %vm378_vm0, %v6101_v37  ;;  %4819 = vmatprep.mubr.msk.f32.mxu1 %vm281_vm1, %v5920_v56  ;;  %v6786_v37 = vld [vmem:[#allocation12_spill] sm:$0xff] }
  0xc1   : > { %5045 = vmatprep.mubr.msk.f32.mxu0 %vm281_vm1, %v5671_v12  ;;  %v6773_v12 = vld [vmem:[#allocation18_spill] sm:$0xff] }
  0xc3   : > { %4820 = vmatmul.mubr.msk.f32.gmra.mrb[18].mxu1 %vm281_vm1, %v5931_v58  ;;  %5046 = vmatmul.mubr.msk.f32.gmra.mrb[2].mxu0 %vm281_vm1, %v5684_v13  ;;  %v6774_v13 = vld [vmem:[#allocation6_spill] sm:$0xff] }
  0xc4   : > { %4822 = vmatprep.mubr.msk.f32.mxu1 %vm281_vm1, %v5937_v60  ;;  %5048 = vmatprep.mubr.msk.f32.mxu0 %vm281_vm1, %v5687_v14  ;;  %v6775_v14 = vld [vmem:[#allocation19_spill] sm:$0xff] }
  0xc7   : > { %4823 = vmatmul.mubr.msk.f32.gmra.mrb[20].mxu1 %vm281_vm1, %v5955_v63  ;;  %5049 = vmatmul.mubr.msk.f32.gmra.mrb[4].mxu0 %vm281_vm1, %v5698_v15  ;;  %v6776_v15 = vld [vmem:[#allocation7_spill] sm:$0xff] }
  0xc8   : > { %4825 = vmatprep.mubr.msk.f32.mxu1 %vm281_vm1, %v5963_v2  ;;  %5051 = vmatprep.mubr.msk.f32.mxu0 %vm281_vm1, %v5701_v16  ;;  %v6777_v16 = vld [vmem:[#allocation20_spill] sm:$0xff] }
  0xcb   : > { %4826 = vmatmul.mubr.msk.f32.gmra.mrb[22].mxu1 %vm281_vm1, %v5979_v4  ;;  %5052 = vmatmul.mubr.msk.f32.gmra.mrb[6].mxu0 %vm281_vm1, %v5712_v17  ;;  %v6778_v17 = vld [vmem:[#allocation8_spill] sm:$0xff] }
  0xcc   : > { %4828 = vmatprep.mubr.msk.f32.mxu1 %vm281_vm1, %v5985_v6  ;;  %5054 = vmatprep.mubr.msk.f32.mxu0 %vm281_vm1, %v5715_v18  ;;  %v6779_v18 = vld [vmem:[#allocation21_spill] sm:$0xff] }
  0xcf   : > { %4829 = vmatmul.mubr.msk.f32.gmra.mrb[24].mxu1 %vm281_vm1, %v5999_v9  ;;  %5055 = vmatmul.mubr.msk.f32.gmra.mrb[8].mxu0 %vm281_vm1, %v5726_v19  ;;  %v6780_v19 = vld [vmem:[#allocation9_spill] sm:$0xff] }
  0xd0   : > { %4831 = vmatprep.mubr.msk.f32.mxu1 %vm281_vm1, %v6005_v55  ;;  %5057 = vmatprep.mubr.msk.f32.mxu0 %vm281_vm1, %v5729_v20  ;;  %v6781_v20 = vld [vmem:[#allocation22_spill] sm:$0xff] }
  0xd3   : > { %4832 = vmatmul.mubr.msk.f32.gmra.mrb[26].mxu1 %vm281_vm1, %v6019_v53  ;;  %5058 = vmatmul.mubr.msk.f32.gmra.mrb[10].mxu0 %vm281_vm1, %v5740_v21  ;;  %v6782_v21 = vld [vmem:[#allocation10_spill] sm:$0xff] }
  0xd4   : > { %4834 = vmatprep.mubr.msk.f32.mxu1 %vm281_vm1, %v6025_v49  ;;  %5060 = vmatprep.mubr.msk.f32.mxu0 %vm281_vm1, %v5743_v22  ;;  %v6784_v22 = vld [vmem:[#allocation11_spill] sm:$0xff] }
  0xd7   : > { %4835 = vmatmul.mubr.msk.f32.gmra.mrb[28].mxu1 %vm281_vm1, %v6039_v45  ;;  %5061 = vmatmul.mubr.msk.f32.gmra.mrb[12].mxu0 %vm281_vm1, %v5754_v23  ;;  %v6785_v23 = vld [vmem:[#allocation24_spill] sm:$0xff] }
  0xd8   : > { %4837 = vmatprep.mubr.msk.f32.mxu1 %vm281_vm1, %v6045_v41  ;;  %5063 = vmatprep.mubr.msk.f32.mxu0 %vm281_vm1, %v5771_v26 }
  0xdb   : > { %4838 = vmatmul.mubr.msk.f32.gmra.mrb[30].mxu1 %vm281_vm1, %v6771_v8  ;;  %5064 = vmatmul.mubr.msk.f32.gmra.mrb[14].mxu0 %vm281_vm1, %v6772_v11  ;;  %v6798_v8 = vld [vmem:[#allocation33_spill] sm:$0xff] }
  0xdc   : > { %4842 = vmatprep.mubr.msk.f32.mxu1 %vm281_vm1, %v6773_v12  ;;  %5066 = vmatprep.mubr.msk.f32.mxu0 %vm281_vm1, %v6774_v13  ;;  %v6790_v12 = vld [vmem:[#allocation14_spill] sm:$0xff] }
  0xdf   : > { %4843 = vmatmul.mubr.msk.f32.vlgmr.msra.gmra.mrb[0].mxu1 %vm281_vm1, %v6775_v14  ;;  %5067 = vmatmul.mubr.msk.f32.gmra.mrb[16].mxu0 %vm281_vm1, %v6776_v15  ;;  %v6791_v14 = vld [vmem:[#allocation27_spill] sm:$0xff] }
  0xe0   : > { %5141 = vmatpush3.msk.msra.mxu1 %vm378_vm0, %v5620_v1  ;;  %4845 = vmatprep.mubr.msk.f32.mxu1 %vm281_vm1, %v6777_v16  ;;  %v6783_v1 = vld [vmem:[#allocation23_spill] sm:$0xff] }
  0xe1   : > { %5069 = vmatprep.mubr.msk.f32.mxu0 %vm281_vm1, %v6778_v17  ;;  %v6792_v16 = vld [vmem:[#allocation15_spill] sm:$0xff] }
  0xe3   : > { %4846 = vmatmul.mubr.msk.f32.gmra.mrb[2].mxu1 %vm281_vm1, %v6779_v18  ;;  %5070 = vmatmul.mubr.msk.f32.gmra.mrb[18].mxu0 %vm281_vm1, %v6780_v19  ;;  %v6793_v18 = vld [vmem:[#allocation28_spill] sm:$0xff] }
  0xe4   : > { %4848 = vmatprep.mubr.msk.f32.mxu1 %vm281_vm1, %v6781_v20  ;;  %5072 = vmatprep.mubr.msk.f32.mxu0 %vm281_vm1, %v6782_v21  ;;  %v6794_v20 = vld [vmem:[#allocation16_spill] sm:$0xff] }
  0xe7   : > { %4849 = vmatmul.mubr.msk.f32.gmra.mrb[4].mxu1 %vm281_vm1, %v6783_v1  ;;  %5073 = vmatmul.mubr.msk.f32.gmra.mrb[20].mxu0 %vm281_vm1, %v6784_v22  ;;  %v6393_v1 = vld [vmem:[%s5641_s11 + $0x181] sm:$0xff] }
  0xe8   : > { %4851 = vmatprep.mubr.msk.f32.mxu1 %vm281_vm1, %v6785_v23  ;;  %5075 = vmatprep.mubr.msk.f32.mxu0 %vm281_vm1, %v6786_v37  ;;  %v6795_v23 = vld [vmem:[#allocation29_spill] sm:$0xff] }
  0xeb   : > { %4852 = vmatmul.mubr.msk.f32.gmra.mrb[6].mxu1 %vm281_vm1, %v6787_v3  ;;  %5076 = vmatmul.mubr.msk.f32.gmra.mrb[22].mxu0 %vm281_vm1, %v6788_v33  ;;  %v6796_v3 = vld [vmem:[#allocation17_spill] sm:$0xff] }
  0xec   : > { %4854 = vmatprep.mubr.msk.f32.mxu1 %vm281_vm1, %v6789_v61  ;;  %5078 = vmatprep.mubr.msk.f32.mxu0 %vm281_vm1, %v6790_v12  ;;  %v6797_v61 = vld [vmem:[#allocation31_spill] sm:$0xff] }
  0xef   : > { %4855 = vmatmul.mubr.msk.f32.gmra.mrb[8].mxu1 %vm281_vm1, %v6791_v14  ;;  %5079 = vmatmul.mubr.msk.f32.gmra.mrb[24].mxu0 %vm281_vm1, %v6792_v16  ;;  %v6404_v14 = vld [vmem:[%s5641_s11 + $0x189] sm:$0xff] }
  0xf0   : > { %4857 = vmatprep.mubr.msk.f32.mxu1 %vm281_vm1, %v6793_v18  ;;  %5081 = vmatprep.mubr.msk.f32.mxu0 %vm281_vm1, %v6794_v20  ;;  %v4284_v18 = vld [vmem:[%s5641_s11 + $0x199] sm:$0xff] }
  0xf3   : > { %4858 = vmatmul.mubr.msk.f32.gmra.mrb[10].mxu1 %vm281_vm1, %v6795_v23  ;;  %5082 = vmatmul.mubr.msk.f32.gmra.mrb[26].mxu0 %vm281_vm1, %v6796_v3  ;;  %v4285_v23 = vld [vmem:[%s5641_s11 + $0x1a1] sm:$0xff]  ;;  %v6799_v3 = vld [vmem:[#allocation35_spill] sm:$0xff] }
  0xf4   : > { %4860 = vmatprep.mubr.msk.f32.mxu1 %vm281_vm1, %v6797_v61  ;;  %5084 = vmatprep.mubr.msk.f32.mxu0 %vm281_vm1, %v6393_v1 }
  0xf7   : > { %4861 = vmatmul.mubr.msk.f32.gmra.mrb[12].mxu1 %vm281_vm1, %v6798_v8  ;;  %5085 = vmatmul.mubr.msk.f32.gmra.mrb[28].mxu0 %vm281_vm1, %v6404_v14 }
  0xf8   : > { %4863 = vmatprep.mubr.msk.f32.mxu1 %vm281_vm1, %v6082_v59  ;;  %5087 = vmatprep.mubr.msk.f32.mxu0 %vm281_vm1, %v4284_v18 }
  0xfb   : > { %4864 = vmatmul.mubr.msk.f32.gmra.mrb[14].mxu1 %vm281_vm1, %v6799_v3  ;;  %5088 = vmatmul.mubr.msk.f32.gmra.mrb[30].mxu0 %vm281_vm1, %v4285_v23 }
  0xfc   : > { %4866 = vmatprep.mubr.msk.f32.mxu1 %vm281_vm1, %v6096_v29  ;;  %5092 = vmatprep.mubr.msk.f32.mxu0 %vm281_vm1, %v5774_v27  ;;  %v6801_v27 = vld [vmem:[#allocation32_spill] sm:$0xff] }
  0xfd   : > { %v4350_v29 = vld [vmem:[%s5641_s11 + $0x19a] sm:$0xff] }
  0xff   : > { %4867 = vmatmul.mubr.msk.f32.gmra.mrb[16].mxu1 %vm281_vm1, %v6112_v31  ;;  %5093 = vmatmul.mubr.msk.f32.vlgmr.msra.gmra.mrb[0].mxu0 %vm281_vm1, %v5792_v30  ;;  %v6802_v30 = vld [vmem:[#allocation17_spill] sm:$0xff]  ;;  %v6803_v31 = vld [vmem:[#allocation34_spill] sm:$0xff] }
 0x100   : > { %4869 = vmatprep.mubr.msk.f32.mxu1 %vm281_vm1, %v6117_v0  ;;  %5095 = vmatprep.mubr.msk.f32.mxu0 %vm281_vm1, %v5800_v32  ;;  %v4351_v32 = vld [vmem:[%s5641_s11 + $0x1a2] sm:$0xff]  ;;  %s3781_s11 = sshll.u32 %s6564_s9, 4  ;;  %s6637_s11 = int_to_ptr.vmem [resolvable:$true] %s3781_s11 }
 0x101   : > { %s5456_s23 = scalar_lea.vmem %s6637_s11, 4096  ;;  %p5463_p1 = scmp.lt.s32.totalorder %s6637_s11, %s5461_s27 }
 0x102   : > { %p5457_p12 = scmp.ne.s32.totalorder %s6637_s11, %s5456_s23  ;;  %p5464_p2 = scmp.lt.s32.totalorder %s5462_s28, %s5456_s23 }
 0x103   : > { %4870 = vmatmul.mubr.msk.f32.gmra.mrb[18].mxu1 %vm281_vm1, %v6130_v28  ;;  %5096 = vmatmul.mubr.msk.f32.gmra.mrb[2].mxu0 %vm281_vm1, %v5816_v34 }
 0x104   : > { %4872 = vmatprep.mubr.msk.f32.mxu1 %vm281_vm1, %v6133_v5  ;;  %5098 = vmatprep.mubr.msk.f32.mxu0 %vm281_vm1, %v5822_v36  ;;  %p5458_p13 = pnand %p5457_p12, %p5599_p4  ;;  %p5465_p3 = por %p5464_p2, %p5463_p1 }
 0x106   : > { %p5459_p0 = pneg %p5458_p13 }
 0x107   : > { %4873 = vmatmul.mubr.msk.f32.gmra.mrb[20].mxu1 %vm281_vm1, %v6144_v7  ;;  %5099 = vmatmul.mubr.msk.f32.gmra.mrb[4].mxu0 %vm281_vm1, %v5836_v38 }
 0x108   : > { %4875 = vmatprep.mubr.msk.f32.mxu1 %vm281_vm1, %v6147_v10  ;;  %5101 = vmatprep.mubr.msk.f32.mxu0 %vm281_vm1, %v5842_v40  ;;  %p5466_p5 = pnand %p5465_p3, %p5459_p0 }
 0x10b   : > { %4876 = vmatmul.mubr.msk.f32.gmra.mrb[22].mxu1 %vm281_vm1, %v6158_v57  ;;  %5102 = vmatmul.mubr.msk.f32.gmra.mrb[6].mxu0 %vm281_vm1, %v5856_v42 }
 0x10c   : > { %4878 = vmatprep.mubr.msk.f32.mxu1 %vm281_vm1, %v6161_v51  ;;  %5104 = vmatprep.mubr.msk.f32.mxu0 %vm281_vm1, %v5862_v44 }
 0x10f   : > { %4879 = vmatmul.mubr.msk.f32.gmra.mrb[24].mxu1 %vm281_vm1, %v6172_v47  ;;  %5105 = vmatmul.mubr.msk.f32.gmra.mrb[8].mxu0 %vm281_vm1, %v5876_v46 }
 0x110   : > { %4881 = vmatprep.mubr.msk.f32.mxu1 %vm281_vm1, %v6175_v43  ;;  %5107 = vmatprep.mubr.msk.f32.mxu0 %vm281_vm1, %v5882_v48 }
 0x113   : > { %4882 = vmatmul.mubr.msk.f32.gmra.mrb[26].mxu1 %vm281_vm1, %v6186_v39  ;;  %5108 = vmatmul.mubr.msk.f32.gmra.mrb[10].mxu0 %vm281_vm1, %v5896_v50 }
 0x114   : > { %4884 = vmatprep.mubr.msk.f32.mxu1 %vm281_vm1, %v6189_v35  ;;  %5110 = vmatprep.mubr.msk.f32.mxu0 %vm281_vm1, %v5902_v52  ;;  %v6558_v52 = vld [vmem:[%s6691_s2] ss:$0 sm:$0xff] }
 0x117   : > { %4885 = vmatmul.mubr.msk.f32.gmra.mrb[28].mxu1 %vm281_vm1, %v6200_v62  ;;  %5111 = vmatmul.mubr.msk.f32.gmra.mrb[12].mxu0 %vm281_vm1, %v5916_v54 }
 0x118   : > { %4887 = vmatprep.mubr.msk.f32.mxu1 %vm281_vm1, %v6255_v24  ;;  %5113 = vmatprep.mubr.msk.f32.mxu0 %vm281_vm1, %v5920_v56 }
 0x11b   : > { %4888 = vmatmul.mubr.msk.f32.gmra.mrb[30].mxu1 %vm281_vm1, %v6266_v25  ;;  %5114 = vmatmul.mubr.msk.f32.gmra.mrb[14].mxu0 %vm281_vm1, %v5931_v58 }
 0x11c   : > { %4916 = vmatprep.mubr.msk.f32.mxu1 %vm281_vm1, %v5771_v26  ;;  %5116 = vmatprep.mubr.msk.f32.mxu0 %vm281_vm1, %v5937_v60  ;;  %v6800_v26 = vld [vmem:[#allocation30_spill] sm:$0xff] }
 0x11f   : > { %4917 = vmatmul.mubr.msk.f32.vlgmr.msra.gmra.mrb[16].mxu1 %vm281_vm1, %v6772_v11  ;;  %5117 = vmatmul.mubr.msk.f32.gmra.mrb[16].mxu0 %vm281_vm1, %v5955_v63 }
 0x120   : > { %4919 = vmatprep.mubr.msk.f32.mxu1 %vm281_vm1, %v6774_v13  ;;  %5119 = vmatprep.mubr.msk.f32.mxu0 %vm281_vm1, %v5963_v2 }
 0x123   : > { %4920 = vmatmul.mubr.msk.f32.gmra.mrb[18].mxu1 %vm281_vm1, %v6776_v15  ;;  %5120 = vmatmul.mubr.msk.f32.gmra.mrb[18].mxu0 %vm281_vm1, %v5979_v4 }
 0x124   : > { %4922 = vmatprep.mubr.msk.f32.mxu1 %vm281_vm1, %v6778_v17  ;;  %5122 = vmatprep.mubr.msk.f32.mxu0 %vm281_vm1, %v5985_v6 }
 0x127   : > { %4923 = vmatmul.mubr.msk.f32.gmra.mrb[20].mxu1 %vm281_vm1, %v6780_v19  ;;  %5123 = vmatmul.mubr.msk.f32.gmra.mrb[20].mxu0 %vm281_vm1, %v5999_v9 }
 0x128   : > { %4925 = vmatprep.mubr.msk.f32.mxu1 %vm281_vm1, %v6782_v21  ;;  %5125 = vmatprep.mubr.msk.f32.mxu0 %vm281_vm1, %v6005_v55 }
 0x12b   : > { %4926 = vmatmul.mubr.msk.f32.gmra.mrb[22].mxu1 %vm281_vm1, %v6784_v22  ;;  %5126 = vmatmul.mubr.msk.f32.gmra.mrb[22].mxu0 %vm281_vm1, %v6019_v53 }
 0x12c   : > { %4928 = vmatprep.mubr.msk.f32.mxu1 %vm281_vm1, %v6786_v37  ;;  %5128 = vmatprep.mubr.msk.f32.mxu0 %vm281_vm1, %v6025_v49 }
 0x12f   : > { %4929 = vmatmul.mubr.msk.f32.gmra.mrb[24].mxu1 %vm281_vm1, %v6788_v33  ;;  %5129 = vmatmul.mubr.msk.f32.gmra.mrb[24].mxu0 %vm281_vm1, %v6039_v45 }
 0x130   : > { %4931 = vmatprep.mubr.msk.f32.mxu1 %vm281_vm1, %v6790_v12  ;;  %5131 = vmatprep.mubr.msk.f32.mxu0 %vm281_vm1, %v6045_v41 }
 0x133   : > { %4932 = vmatmul.mubr.msk.f32.gmra.mrb[26].mxu1 %vm281_vm1, %v6792_v16  ;;  %5132 = vmatmul.mubr.msk.f32.gmra.mrb[26].mxu0 %vm281_vm1, %v6800_v26 }
 0x134   : > { %4934 = vmatprep.mubr.msk.f32.mxu1 %vm281_vm1, %v6794_v20  ;;  %5134 = vmatprep.mubr.msk.f32.mxu0 %vm281_vm1, %v6801_v27 }
 0x137   : > { %4935 = vmatmul.mubr.msk.f32.gmra.mrb[28].mxu1 %vm281_vm1, %v6802_v30  ;;  %5135 = vmatmul.mubr.msk.f32.gmra.mrb[28].mxu0 %vm281_vm1, %v6803_v31 }
 0x138   : > { %4937 = vmatprep.mubr.msk.f32.mxu1 %vm281_vm1, %v6393_v1  ;;  %5137 = vmatprep.mubr.msk.f32.mxu0 %vm281_vm1, %v4350_v29 }
 0x13b   : > { %4938 = vmatmul.mubr.msk.f32.gmra.mrb[30].mxu1 %vm281_vm1, %v6404_v14  ;;  %5138 = vmatmul.mubr.msk.f32.gmra.mrb[30].mxu0 %vm281_vm1, %v4351_v32 }
 0x1b2   : > { %v4844_v34 = vpop.f32.mrb[0].mxu1 }
 0x1b3   : > { %v1521_v35 = vpop.f32.mrb[1].mxu1 }
 0x1b6   : > { %v4847_v36 = vpop.f32.mrb[2].mxu1 }
 0x1b7   : > { %v1531_v38 = vpop.f32.mrb[3].mxu1 }
 0x1ba   : > { %v4850_v39 = vpop.f32.mrb[4].mxu1 }
 0x1bb   : > { %v1541_v40 = vpop.f32.mrb[5].mxu1 }
 0x1be   : > { %v4853_v41 = vpop.f32.mrb[6].mxu1 }
 0x1bf   : > { %v1551_v42 = vpop.f32.mrb[7].mxu1 }
 0x1c2   : > { %v4856_v43 = vpop.f32.mrb[8].mxu1 }
 0x1c3   : > { %v1561_v44 = vpop.f32.mrb[9].mxu1 }
 0x1c6   : > { %v4859_v45 = vpop.f32.mrb[10].mxu1 }
 0x1c7   : > { %v1571_v46 = vpop.f32.mrb[11].mxu1 }
 0x1ca   : > { %v6546_v47 = vpop.f32.mrb[12].mxu1 }
 0x1cb   : > { %v6548_v48 = vpop.f32.mrb[13].mxu1 }
 0x1ce   : > { %v6550_v49 = vpop.f32.mrb[14].mxu1 }
 0x1cf   : > { %v6552_v50 = vpop.f32.mrb[15].mxu1 }
 0x1d2   : > { %v5094_v51 = vpop.f32.mrb[0].mxu0 }
 0x1d3   : > { %v5142_v53 = vadd.f32 %v5094_v51, %v4844_v34  ;;  %v3472_v54 = vpop.f32.mrb[1].mxu0 }
 0x1d4   : > { %v5143_v56 = vadd.f32 %v3472_v54, %v1521_v35 }
 0x1d5   : > { %v3671_v58 = vadd.f32 %v5142_v53, %v6558_v52 }
 0x1d6   : > { %v3670_v59 = vadd.f32 %v5143_v56, %v6558_v52  ;;  %v5097_v60 = vpop.f32.mrb[2].mxu0 }
 0x1d7   : > { %v3703_v62 = vmax.f32 %v3671_v58, 0.0  ;;  %v5144_v63 = vadd.f32 %v5097_v60, %v4847_v36  ;;  %v3482_v0 = vpop.f32.mrb[3].mxu0 }
 0x1d8   : > { %v3702_v2 = vmax.f32 %v3670_v59, 0.0  ;;  %v5145_v4 = vadd.f32 %v3482_v0, %v1531_v38 }
 0x1d9   : > { %3735 = vst [vmem:[%s6564_s9 + $0x8] sm:$0xff] %v3703_v62  ;;  %v3673_v5 = vadd.f32 %v5144_v63, %v6558_v52 }
 0x1da   : > { %3734 = vst [vmem:[%s6564_s9] sm:$0xff] %v3702_v2  ;;  %v3672_v6 = vadd.f32 %v5145_v4, %v6558_v52  ;;  %v5100_v7 = vpop.f32.mrb[4].mxu0 }
 0x1db   : > { %v3705_v9 = vmax.f32 %v3673_v5, 0.0  ;;  %v5146_v10 = vadd.f32 %v5100_v7, %v4850_v39  ;;  %v3492_v55 = vpop.f32.mrb[5].mxu0 }
 0x1dc   : > { %v3704_v57 = vmax.f32 %v3672_v6, 0.0  ;;  %v5147_v28 = vadd.f32 %v3492_v55, %v1541_v40 }
 0x1dd   : > { %3737 = vst [vmem:[%s6564_s9 + $0x18] sm:$0xff] %v3705_v9  ;;  %v3675_v24 = vadd.f32 %v5146_v10, %v6558_v52 }
 0x1de   : > { %3736 = vst [vmem:[%s6564_s9 + $0x10] sm:$0xff] %v3704_v57  ;;  %v3674_v25 = vadd.f32 %v5147_v28, %v6558_v52  ;;  %v5103_v8 = vpop.f32.mrb[6].mxu0 }
 0x1df   : > { %v3707_v11 = vmax.f32 %v3675_v24, 0.0  ;;  %v5148_v13 = vadd.f32 %v5103_v8, %v4853_v41  ;;  %v3502_v15 = vpop.f32.mrb[7].mxu0 }
 0x1e0   : > { %v3706_v17 = vmax.f32 %v3674_v25, 0.0  ;;  %v5149_v19 = vadd.f32 %v3502_v15, %v1551_v42 }
 0x1e1   : > { %3739 = vst [vmem:[%s6564_s9 + $0x28] sm:$0xff] %v3707_v11  ;;  %v3677_v21 = vadd.f32 %v5148_v13, %v6558_v52 }
 0x1e2   : > { %3738 = vst [vmem:[%s6564_s9 + $0x20] sm:$0xff] %v3706_v17  ;;  %v3676_v22 = vadd.f32 %v5149_v19, %v6558_v52  ;;  %v5106_v37 = vpop.f32.mrb[8].mxu0 }
 0x1e3   : > { %v3709_v33 = vmax.f32 %v3677_v21, 0.0  ;;  %v5150_v12 = vadd.f32 %v5106_v37, %v4856_v43  ;;  %v3512_v16 = vpop.f32.mrb[9].mxu0 }
 0x1e4   : > { %v3708_v20 = vmax.f32 %v3676_v22, 0.0  ;;  %v5151_v1 = vadd.f32 %v3512_v16, %v1561_v44 }
 0x1e5   : > { %3741 = vst [vmem:[%s6564_s9 + $0x38] sm:$0xff] %v3709_v33  ;;  %v3679_v3 = vadd.f32 %v5150_v12, %v6558_v52 }
 0x1e6   : > { %3740 = vst [vmem:[%s6564_s9 + $0x30] sm:$0xff] %v3708_v20  ;;  %v3678_v61 = vadd.f32 %v5151_v1, %v6558_v52  ;;  %v5109_v14 = vpop.f32.mrb[10].mxu0 }
 0x1e7   : > { %v3711_v18 = vmax.f32 %v3679_v3, 0.0  ;;  %v5152_v23 = vadd.f32 %v5109_v14, %v4859_v45  ;;  %v3522_v26 = vpop.f32.mrb[11].mxu0 }
 0x1e8   : > { %v3710_v27 = vmax.f32 %v3678_v61, 0.0  ;;  %v5153_v29 = vadd.f32 %v3522_v26, %v1571_v46 }
 0x1e9   : > { %3743 = vst [vmem:[%s6564_s9 + $0x48] sm:$0xff] %v3711_v18  ;;  %v3681_v30 = vadd.f32 %v5152_v23, %v6558_v52 }
 0x1ea   : > { %3742 = vst [vmem:[%s6564_s9 + $0x40] sm:$0xff] %v3710_v27  ;;  %v3680_v31 = vadd.f32 %v5153_v29, %v6558_v52  ;;  %v5112_v32 = vpop.f32.mrb[12].mxu0 }
 0x1eb   : > { %v3713_v34 = vmax.f32 %v3681_v30, 0.0  ;;  %v5154_v35 = vadd.f32 %v5112_v32, %v6546_v47  ;;  %v3532_v36 = vpop.f32.mrb[13].mxu0 }
 0x1ec   : > { %v3712_v38 = vmax.f32 %v3680_v31, 0.0  ;;  %v5155_v39 = vadd.f32 %v3532_v36, %v6548_v48 }
 0x1ed   : > { %3745 = vst [vmem:[%s6564_s9 + $0x58] sm:$0xff] %v3713_v34  ;;  %v3683_v40 = vadd.f32 %v5154_v35, %v6558_v52 }
 0x1ee   : > { %3744 = vst [vmem:[%s6564_s9 + $0x50] sm:$0xff] %v3712_v38  ;;  %v3682_v41 = vadd.f32 %v5155_v39, %v6558_v52  ;;  %v5115_v42 = vpop.f32.mrb[14].mxu0 }
 0x1ef   : > { %v3715_v43 = vmax.f32 %v3683_v40, 0.0  ;;  %v5156_v44 = vadd.f32 %v5115_v42, %v6550_v49  ;;  %v3542_v45 = vpop.f32.mrb[15].mxu0 }
 0x1f0   : > { %v3714_v46 = vmax.f32 %v3682_v41, 0.0  ;;  %v5157_v47 = vadd.f32 %v3542_v45, %v6552_v50 }
 0x1f1   : > { %3747 = vst [vmem:[%s6564_s9 + $0x68] sm:$0xff] %v3715_v43  ;;  %v3685_v51 = vadd.f32 %v5156_v44, %v6558_v52 }
 0x1f2   : > { %3746 = vst [vmem:[%s6564_s9 + $0x60] sm:$0xff] %v3714_v46  ;;  %v3684_v48 = vadd.f32 %v5157_v47, %v6558_v52  ;;  %v4918_v53 = vpop.f32.mrb[16].mxu1  ;;  %v5118_v54 = vpop.f32.mrb[16].mxu0 }
 0x1f3   : > { %v3717_v56 = vmax.f32 %v3685_v51, 0.0  ;;  %v5158_v58 = vadd.f32 %v5118_v54, %v4918_v53  ;;  %v1991_v59 = vpop.f32.mrb[17].mxu1  ;;  %v3552_v60 = vpop.f32.mrb[17].mxu0 }
 0x1f4   : > { %v3716_v49 = vmax.f32 %v3684_v48, 0.0  ;;  %v5159_v62 = vadd.f32 %v3552_v60, %v1991_v59 }
 0x1f5   : > { %3749 = vst [vmem:[%s6564_s9 + $0x78] sm:$0xff] %v3717_v56  ;;  %v3687_v63 = vadd.f32 %v5158_v58, %v6558_v52 }
 0x1f6   : > { %3748 = vst [vmem:[%s6564_s9 + $0x70] sm:$0xff] %v3716_v49  ;;  %v3686_v50 = vadd.f32 %v5159_v62, %v6558_v52  ;;  %v4921_v0 = vpop.f32.mrb[18].mxu1  ;;  %v5121_v2 = vpop.f32.mrb[18].mxu0 }
 0x1f7   : > { %v3719_v4 = vmax.f32 %v3687_v63, 0.0  ;;  %v5160_v5 = vadd.f32 %v5121_v2, %v4921_v0  ;;  %v2001_v6 = vpop.f32.mrb[19].mxu1  ;;  %v3562_v7 = vpop.f32.mrb[19].mxu0 }
 0x1f8   : > { %v3718_v9 = vmax.f32 %v3686_v50, 0.0  ;;  %v5161_v10 = vadd.f32 %v3562_v7, %v2001_v6 }
 0x1f9   : > { %3751 = vst [vmem:[%s6564_s9 + $0x88] sm:$0xff] %v3719_v4  ;;  %v3689_v55 = vadd.f32 %v5160_v5, %v6558_v52 }
 0x1fa   : > { %3750 = vst [vmem:[%s6564_s9 + $0x80] sm:$0xff] %v3718_v9  ;;  %v3688_v57 = vadd.f32 %v5161_v10, %v6558_v52  ;;  %v4924_v28 = vpop.f32.mrb[20].mxu1  ;;  %v5124_v24 = vpop.f32.mrb[20].mxu0 }
 0x1fb   : > { %v3721_v25 = vmax.f32 %v3689_v55, 0.0  ;;  %v5162_v8 = vadd.f32 %v5124_v24, %v4924_v28  ;;  %v2011_v11 = vpop.f32.mrb[21].mxu1  ;;  %v3572_v13 = vpop.f32.mrb[21].mxu0 }
 0x1fc   : > { %v3720_v15 = vmax.f32 %v3688_v57, 0.0  ;;  %v5163_v17 = vadd.f32 %v3572_v13, %v2011_v11 }
 0x1fd   : > { %3753 = vst [vmem:[%s6564_s9 + $0x98] sm:$0xff] %v3721_v25  ;;  %v3691_v19 = vadd.f32 %v5162_v8, %v6558_v52 }
 0x1fe   : > { %3752 = vst [vmem:[%s6564_s9 + $0x90] sm:$0xff] %v3720_v15  ;;  %v3690_v21 = vadd.f32 %v5163_v17, %v6558_v52  ;;  %v4927_v22 = vpop.f32.mrb[22].mxu1  ;;  %v5127_v37 = vpop.f32.mrb[22].mxu0 }
 0x1ff   : > { %v3723_v33 = vmax.f32 %v3691_v19, 0.0  ;;  %v5164_v12 = vadd.f32 %v5127_v37, %v4927_v22  ;;  %v2021_v16 = vpop.f32.mrb[23].mxu1  ;;  %v3582_v20 = vpop.f32.mrb[23].mxu0 }
 0x200   : > { %v3722_v1 = vmax.f32 %v3690_v21, 0.0  ;;  %v5165_v3 = vadd.f32 %v3582_v20, %v2021_v16 }
 0x201   : > { %3755 = vst [vmem:[%s6564_s9 + $0xa8] sm:$0xff] %v3723_v33  ;;  %v3693_v61 = vadd.f32 %v5164_v12, %v6558_v52 }
 0x202   : > { %3754 = vst [vmem:[%s6564_s9 + $0xa0] sm:$0xff] %v3722_v1  ;;  %v3692_v14 = vadd.f32 %v5165_v3, %v6558_v52  ;;  %v4930_v18 = vpop.f32.mrb[24].mxu1  ;;  %v5130_v23 = vpop.f32.mrb[24].mxu0 }
 0x203   : > { %v3725_v26 = vmax.f32 %v3693_v61, 0.0  ;;  %v5166_v27 = vadd.f32 %v5130_v23, %v4930_v18  ;;  %v2031_v29 = vpop.f32.mrb[25].mxu1  ;;  %v3592_v30 = vpop.f32.mrb[25].mxu0 }
 0x204   : > { %v3724_v31 = vmax.f32 %v3692_v14, 0.0  ;;  %v5167_v32 = vadd.f32 %v3592_v30, %v2031_v29 }
 0x205   : > { %3757 = vst [vmem:[%s6564_s9 + $0xb8] sm:$0xff] %v3725_v26  ;;  %v3695_v34 = vadd.f32 %v5166_v27, %v6558_v52 }
 0x206   : > { %3756 = vst [vmem:[%s6564_s9 + $0xb0] sm:$0xff] %v3724_v31  ;;  %v3694_v35 = vadd.f32 %v5167_v32, %v6558_v52  ;;  %v4933_v36 = vpop.f32.mrb[26].mxu1  ;;  %v5133_v38 = vpop.f32.mrb[26].mxu0 }
 0x207   : > { %v3727_v39 = vmax.f32 %v3695_v34, 0.0  ;;  %v5168_v40 = vadd.f32 %v5133_v38, %v4933_v36  ;;  %v2041_v41 = vpop.f32.mrb[27].mxu1  ;;  %v3602_v42 = vpop.f32.mrb[27].mxu0 }
 0x208   : > { %v3726_v43 = vmax.f32 %v3694_v35, 0.0  ;;  %v5169_v44 = vadd.f32 %v3602_v42, %v2041_v41 }
 0x209   : > { %3759 = vst [vmem:[%s6564_s9 + $0xc8] sm:$0xff] %v3727_v39  ;;  %v3697_v45 = vadd.f32 %v5168_v40, %v6558_v52 }
 0x20a   : > { %3758 = vst [vmem:[%s6564_s9 + $0xc0] sm:$0xff] %v3726_v43  ;;  %v3696_v46 = vadd.f32 %v5169_v44, %v6558_v52  ;;  %v4936_v47 = vpop.f32.mrb[28].mxu1  ;;  %v5136_v51 = vpop.f32.mrb[28].mxu0 }
 0x20b   : > { %v3729_v48 = vmax.f32 %v3697_v45, 0.0  ;;  %v5170_v53 = vadd.f32 %v5136_v51, %v4936_v47  ;;  %v2051_v54 = vpop.f32.mrb[29].mxu1  ;;  %v3612_v56 = vpop.f32.mrb[29].mxu0 }
 0x20c   : > { %v3728_v58 = vmax.f32 %v3696_v46, 0.0  ;;  %v5171_v59 = vadd.f32 %v3612_v56, %v2051_v54 }
 0x20d   : > { %3761 = vst [vmem:[%s6564_s9 + $0xd8] sm:$0xff] %v3729_v48  ;;  %v3699_v60 = vadd.f32 %v5170_v53, %v6558_v52 }
 0x20e   : > { %3760 = vst [vmem:[%s6564_s9 + $0xd0] sm:$0xff] %v3728_v58  ;;  %v3698_v49 = vadd.f32 %v5171_v59, %v6558_v52  ;;  %v4939_v62 = vpop.f32.mrb[30].mxu1  ;;  %v5139_v63 = vpop.f32.mrb[30].mxu0 }
 0x20f   : > { %v3731_v50 = vmax.f32 %v3699_v60, 0.0  ;;  %v5172_v0 = vadd.f32 %v5139_v63, %v4939_v62  ;;  %v2061_v2 = vpop.f32.mrb[31].mxu1  ;;  %v3622_v4 = vpop.f32.mrb[31].mxu0 }
 0x210   : > { %v3730_v5 = vmax.f32 %v3698_v49, 0.0  ;;  %v5173_v6 = vadd.f32 %v3622_v4, %v2061_v2 }
 0x211   : > { %3763 = vst [vmem:[%s6564_s9 + $0xe8] sm:$0xff] %v3731_v50  ;;  %v3701_v7 = vadd.f32 %v5172_v0, %v6558_v52 }
 0x212   : > { %3762 = vst [vmem:[%s6564_s9 + $0xe0] sm:$0xff] %v3730_v5  ;;  %v3700_v9 = vadd.f32 %v5173_v6, %v6558_v52 }
 0x213   : > { %v3733_v10 = vmax.f32 %v3701_v7, 0.0 }
 0x214   : > { %v3732_v55 = vmax.f32 %v3700_v9, 0.0 }
 0x215   : > { %3765 = vst [vmem:[%s6564_s9 + $0xf8] sm:$0xff] %v3733_v10 }
 0x216   : > { %3764 = vst [vmem:[%s6564_s9 + $0xf0] sm:$0xff] %v3732_v55 }
 0x217   : > { %5469 = shalt.err (!%p5466_p5)
}
 0x218   : > { %s5470_s29 = scalar_lea.hbm %s6635_s21, 4096  ;;  %s5474_s5 = scalar_lea.hbm %s6692_s3, 8192 }
 0x219   : > { %p5471_p6 = scmp.ne.s32.totalorder %s6635_s21, %s5470_s29  ;;  %p5475_p10 = scmp.lt.u32.totalorder %s6635_s21, %s6692_s3 }
 0x21a   : > { %p5476_p11 = scmp.lt.u32.totalorder %s5474_s5, %s5470_s29  ;;  %p5478_p13 = scmp.lt.u32.totalorder %s5470_s29, %s6635_s21 }
 0x21b   : > { %p5472_p7 = pnand %p5471_p6, %p5599_p4 }
 0x21c   : > { %p5477_p12 = por %p5476_p11, %p5475_p10 }
 0x21d   : > { %p5473_p9 = pneg %p5472_p7 }
 0x21e   : > { %p5479_p0 = por %p5478_p13, %p5477_p12 }
 0x220   : > { %p5480_p1 = pnand %p5479_p0, %p5473_p9 }
 0x222   : > { %5483 = shalt.err (!%p5480_p1)
}
 0x223   : > { %s5537_s8 = smov 128   ;;  %s5538_s9 = smov 8  }
 0x224   : > { %5399 = dma.vmem_to_hbm [thread:$0]  (%p5599_p4), %s6637_s11, 4096, %s6635_s21, %s6643_s15, %s5537_s8, %s5537_s8, %s5538_s9  }
 0x225 PF: > { %p5405_p2 = scmp.ge.s32.totalorder %s5534_s17, 2  ;;  %s3796_s10 = sand.u32 1, %s5514_s12  }
 0x226   : > { %s3797_s18 = scalar_lea.sflag [#allocation3], %s3796_s10 }
 0x227   : > { %p5402_p3 = pnand %p5405_p2, %p5606_p8 }
 0x229   : > { %5509 = dma.done.wait (!%p5402_p3), %s3797_s18, 4096  }
 0x22a   : > { %5511 = vsyncadd (!%p5402_p3), %s3797_s18, 4294963200  ;;  %s16_s17 = sadd.s32 1, %s5534_s17   ;;  %s6804_s12 = smov %s5518_s13 }
 0x22b   : > { %p13_p5 = scmp.ge.s32.totalorder %s16_s17, 4   ;;  %s6805_s13 = smov %s5522_s14 }
 0x22c   : > { %s6806_s14 = smov %s5612_s25  ;;  %s6807_s15 = smov %s5530_s16 }
 0x22d   : > { %s6808_s16 = smov %s6810_s20  ;;  %15 = sbr.rel (!%p13_p5) target bundleno = 4 (0x4), region = 83 }
 0x234   :  { %3802 = vsyncpa [#allocation3], 1 }
 0x235   :  { %3804 = vsyncpa [#allocation3 + $0x1], 1 }

</bundles_post_ra>
